<compile_context>
chip_gen: v7x
topology: tpu7x:2x2x1
jax: 0.10.0
libtpu: 0.0.40
codegen_flags: <defaults>
</compile_context>

<pallas_src>
import jax
import jax.numpy as jnp
from jax import lax
from jax.experimental import pallas as pl
from jax.experimental.pallas import tpu as pltpu


def tls_lstm_kernel(x_ref, wih1_ref, b1_ref, wbd_ref, wih2_ref, b2_ref,
                    wfc_ref, bfc_ref,
                    out_ref, state_ref):
    """Whole-sequence 2-layer LSTM; everything resident in VMEM.

    x_ref    : (T*B, I)   raw input, time-major rows (t*B + b)
    wih1_ref : (I, 4H)    layer-1 input weights (pre-transposed)
    b1_ref   : (1, 4H)    layer-1 combined bias (b_ih + b_hh)
    wbd_ref  : (2H, 8H)   block-diagonal [whh1 | 0 ; 0 | whh2]
    wih2_ref : (H, 4H)    layer-2 input weights
    b2_ref   : (1, 4H)    layer-2 combined bias
    wfc_ref  : (H, O), bfc_ref : (1, O)
    out_ref  : (B, O)     fc(last hidden of layer 2)
    state_ref: (B, 4H)    [h1 | c1 | h2 | c2] coalesced, lane-dense
    """
    G = wih1_ref.shape[1]          # 4H
    H = G // 4
    B = out_ref.shape[0]
    TB = x_ref.shape[0]
    T = TB // B

    # ---- prologue: whole-sequence layer-1 input projection (bias folded in) ----
    x1 = (jnp.dot(x_ref[...], wih1_ref[...],
                  preferred_element_type=jnp.float32)
          + b1_ref[...])                                   # (T*B, 4H)

    wbd = wbd_ref[...]                                     # (2H, 8H)
    wih2 = wih2_ref[...]                                   # (H, 4H)
    b2 = jnp.broadcast_to(b2_ref[...], (B, G))             # hoisted broadcast

    # Lane mask selecting the tanh ("g") gate region, hoisted out of the loop.
    lane = lax.broadcasted_iota(jnp.int32, (B, G), 1)
    g_mask = (lane >= 2 * H) & (lane < 3 * H)

    def gates_to_hc(gates, c):
        # Full-vreg activation: sigmoid everywhere, tanh on the g lanes
        # (2 full-width EUP passes + 1 select instead of 4 masked narrow ones).
        act = jnp.where(g_mask, jnp.tanh(gates), jax.nn.sigmoid(gates))
        # i*g in one full-width multiply: rolling by 2H (== half of 4H, so the
        # roll direction is irrelevant) aligns g over i. XLU slot, not VALU.
        prod = act * pltpu.roll(act, 2 * H, axis=1)
        ig = prod[:, 0:H]                  # i * g
        f = act[:, H:2 * H]
        o = act[:, 3 * H:4 * H]
        c_new = f * c + ig
        h_new = o * jnp.tanh(c_new)
        return h_new, c_new

    z = jnp.zeros((B, H), jnp.float32)
    h1, c1, h2, c2 = z, z, z, z

    # Fully unrolled static time loop (T is small here).
    for t in range(T):
        # One 256-wide dot on previous-step state gives both hh contributions.
        hh = jnp.dot(jnp.concatenate([h1, h2], axis=-1), wbd,
                     preferred_element_type=jnp.float32)   # (B, 8H)
        gates1 = x1[t * B:(t + 1) * B, :] + hh[:, 0:G]
        h1, c1 = gates_to_hc(gates1, c1)
        # dropout1 == identity (eval)
        gates2 = (jnp.dot(h1, wih2, preferred_element_type=jnp.float32)
                  + hh[:, G:2 * G] + b2)
        h2, c2 = gates_to_hc(gates2, c2)
        # dropout2 == identity (eval)

    # fc + coalesced output stores exactly once, after the recurrence.
    out_ref[...] = (jnp.dot(h2, wfc_ref[...],
                            preferred_element_type=jnp.float32)
                    + bfc_ref[...]).astype(out_ref.dtype)
    state_ref[...] = jnp.concatenate([h1, c1, h2, c2],
                                     axis=-1).astype(state_ref.dtype)


def tls_lstm_forward(x, params):
    """x: (B, T, I) f32.  Returns (out (B,O), ((h1,c1),(h2,c2)) each (1,B,H))."""
    B, T, I = x.shape
    H = params["whh1"].shape[0]
    O = params["wfc"].shape[1]
    G = 4 * H

    # Time-major flat input (rows = t*B + b); raw x, projection happens in-kernel.
    x_tm = jnp.transpose(x, (1, 0, 2)).reshape(T * B, I)

    # Block-diagonal packing of the two hidden->hidden weights (param prep;
    # could be done once at init in a production setting).
    w_bd = jnp.zeros((2 * H, 2 * G), jnp.float32)
    w_bd = w_bd.at[0:H, 0:G].set(params["whh1"])
    w_bd = w_bd.at[H:2 * H, G:2 * G].set(params["whh2"])

    out_shapes = (
        jax.ShapeDtypeStruct((B, O), jnp.float32),   # fc(last hidden)
        jax.ShapeDtypeStruct((B, G), jnp.float32),   # [h1|c1|h2|c2]
    )

    # Single invocation, no grid: all operands are whole-array blocks in VMEM
    # (a few KiB at these shapes); the time recurrence lives inside the kernel.
    out, state = pl.pallas_call(
        tls_lstm_kernel,
        out_shape=out_shapes,
    )(x_tm, params["wih1"], params["b1"], w_bd, params["wih2"], params["b2"],
      params["wfc"], params["bfc"])

    h1 = state[:, 0:H][None, :, :]
    c1 = state[:, H:2 * H][None, :, :]
    h2 = state[:, 2 * H:3 * H][None, :, :]
    c2 = state[:, 3 * H:4 * H][None, :, :]
    return out, ((h1, c1), (h2, c2))


def tls_lstm_reference(x, params):
    """Pure-JAX reference (lax.scan) matching PyTorch LSTM semantics."""
    B, T, I = x.shape
    H = params["whh1"].shape[0]

    def cell(x_t, h, c, wih_t, whh_t, b):
        gates = (jnp.dot(x_t, wih_t, precision=lax.Precision.HIGHEST)
                 + jnp.dot(h, whh_t, precision=lax.Precision.HIGHEST) + b)
        i = jax.nn.sigmoid(gates[:, 0 * H:1 * H])
        f = jax.nn.sigmoid(gates[:, 1 * H:2 * H])
        g = jnp.tanh(gates[:, 2 * H:3 * H])
        o = jax.nn.sigmoid(gates[:, 3 * H:4 * H])
        c_new = f * c + i * g
        return o * jnp.tanh(c_new), c_new

    def step(carry, x_t):
        h1, c1, h2, c2 = carry
        h1, c1 = cell(x_t, h1, c1, params["wih1"], params["whh1"], params["b1"])
        h2, c2 = cell(h1, h2, c2, params["wih2"], params["whh2"], params["b2"])
        return (h1, c1, h2, c2), h2

    z = jnp.zeros((B, H), jnp.float32)
    (h1, c1, h2, c2), _ = lax.scan(step, (z, z, z, z),
                                   jnp.transpose(x, (1, 0, 2)))
    out = (jnp.dot(h2, params["wfc"], precision=lax.Precision.HIGHEST)
           + params["bfc"])
    return out, ((h1[None], c1[None]), (h2[None], c2[None]))


def init_params(key, input_size, hidden_size, output_size):
    H = hidden_size
    k = 1.0 / jnp.sqrt(jnp.float32(H))
    keys = jax.random.split(key, 12)
    u = lambda kk, shape: jax.random.uniform(kk, shape, jnp.float32, -k, k)

    # PyTorch stores W_ih:(4H,in), W_hh:(4H,H); we pre-transpose for the kernel.
    wih1 = u(keys[0], (4 * H, input_size)).T            # (I, 4H)
    whh1 = u(keys[1], (4 * H, H)).T                     # (H, 4H)
    b1 = (u(keys[2], (4 * H,)) + u(keys[3], (4 * H,)))[None, :]
    wih2 = u(keys[4], (4 * H, H)).T                     # (H, 4H)
    whh2 = u(keys[5], (4 * H, H)).T                     # (H, 4H)
    b2 = (u(keys[6], (4 * H,)) + u(keys[7], (4 * H,)))[None, :]
    kf = 1.0 / jnp.sqrt(jnp.float32(H))
    wfc = jax.random.uniform(keys[8], (output_size, H), jnp.float32, -kf, kf).T
    bfc = jax.random.uniform(keys[9], (output_size,), jnp.float32, -kf, kf)[None, :]
    return dict(wih1=wih1, whh1=whh1, b1=b1,
                wih2=wih2, whh2=whh2, b2=b2,
                wfc=wfc, bfc=bfc)


if __name__ == "__main__":
    B, T, I, H, O = 4, 8, 1, 32, 1
    key = jax.random.PRNGKey(0)
    k_x, k_p = jax.random.split(key)
    x = jax.random.normal(k_x, (B, T, I), jnp.float32)
    params = init_params(k_p, I, H, O)

    out, ((h1, c1), (h2, c2)) = jax.block_until_ready(
        tls_lstm_forward(x, params))

    # correctness check against pure-JAX reference
    ref_out, ((rh1, rc1), (rh2, rc2)) = tls_lstm_reference(x, params)
    assert out.shape == (B, O) and h1.shape == (1, B, H)
    assert jnp.allclose(out, ref_out, atol=1e-4, rtol=1e-4)
    assert jnp.allclose(h1, rh1, atol=1e-4, rtol=1e-4)
    assert jnp.allclose(c1, rc1, atol=1e-4, rtol=1e-4)
    assert jnp.allclose(h2, rh2, atol=1e-4, rtol=1e-4)
    assert jnp.allclose(c2, rc2, atol=1e-4, rtol=1e-4)

    print("KERNEL_OK")
</pallas_src>

<mosaic_0001>
module attributes {stable_mosaic.version = 11 : i64} {
  func.func @tls_lstm_kernel(%arg0: memref<32x1xf32, #tpu.memory_space<vmem>>, %arg1: memref<1x128xf32, #tpu.memory_space<vmem>>, %arg2: memref<1x128xf32, #tpu.memory_space<vmem>>, %arg3: memref<64x256xf32, #tpu.memory_space<vmem>>, %arg4: memref<32x128xf32, #tpu.memory_space<vmem>>, %arg5: memref<1x128xf32, #tpu.memory_space<vmem>>, %arg6: memref<32x1xf32, #tpu.memory_space<vmem>>, %arg7: memref<1x1xf32, #tpu.memory_space<vmem>>, %arg8: memref<4x1xf32, #tpu.memory_space<vmem>>, %arg9: memref<4x128xf32, #tpu.memory_space<vmem>>) attributes {dimension_semantics = [], scalar_prefetch = 0 : i64, scratch_operands = 0 : i64, tpu.core_type = #tpu.core_type<tc>} {
    %c0 = arith.constant 0 : index
    %c0_0 = arith.constant 0 : index
    %0 = vector.load %arg0[%c0, %c0_0] : memref<32x1xf32, #tpu.memory_space<vmem>>, vector<32x1xf32>
    %c0_1 = arith.constant 0 : index
    %c0_2 = arith.constant 0 : index
    %1 = vector.load %arg1[%c0_1, %c0_2] : memref<1x128xf32, #tpu.memory_space<vmem>>, vector<1x128xf32>
    %cst = arith.constant dense<0.000000e+00> : vector<32x128xf32>
    %2 = tpu.matmul %0, %1, %cst {dimension_numbers = #tpu.dot_dimension_numbers<[1], [0], [0], [1], [0, 0, 1, 1], [], []>} : vector<32x1xf32>, vector<1x128xf32>, vector<32x128xf32> -> vector<32x128xf32>
    %c0_3 = arith.constant 0 : index
    %c0_4 = arith.constant 0 : index
    %3 = vector.load %arg2[%c0_3, %c0_4] : memref<1x128xf32, #tpu.memory_space<vmem>>, vector<1x128xf32>
    %4 = vector.broadcast %3 : vector<1x128xf32> to vector<32x128xf32>
    %5 = arith.addf %2, %4 : vector<32x128xf32>
    %c0_5 = arith.constant 0 : index
    %c0_6 = arith.constant 0 : index
    %6 = vector.load %arg3[%c0_5, %c0_6] : memref<64x256xf32, #tpu.memory_space<vmem>>, vector<64x256xf32>
    %c0_7 = arith.constant 0 : index
    %c0_8 = arith.constant 0 : index
    %7 = vector.load %arg4[%c0_7, %c0_8] : memref<32x128xf32, #tpu.memory_space<vmem>>, vector<32x128xf32>
    %c0_9 = arith.constant 0 : index
    %c0_10 = arith.constant 0 : index
    %8 = vector.load %arg5[%c0_9, %c0_10] : memref<1x128xf32, #tpu.memory_space<vmem>>, vector<1x128xf32>
    %9 = vector.shape_cast %8 : vector<1x128xf32> to vector<1x128xf32>
    %10 = vector.broadcast %9 : vector<1x128xf32> to vector<4x128xf32>
    %11 = tpu.iota {dimensions = array<i32: 1>} : vector<4x128xi32>
    %c64_i32 = arith.constant 64 : i32
    %12 = vector.broadcast %c64_i32 : i32 to vector<4x128xi32>
    %13 = arith.cmpi sge, %11, %12 : vector<4x128xi32>
    %c96_i32 = arith.constant 96 : i32
    %14 = vector.broadcast %c96_i32 : i32 to vector<4x128xi32>
    %15 = arith.cmpi slt, %11, %14 : vector<4x128xi32>
    %16 = arith.andi %13, %15 : vector<4x128xi1>
    %cst_11 = arith.constant 0.000000e+00 : f32
    %17 = vector.broadcast %cst_11 : f32 to vector<4x32xf32>
    %18 = tpu.concatenate %17, %17 in 1 : vector<4x32xf32>, vector<4x32xf32> -> vector<4x64xf32>
    %cst_12 = arith.constant dense<0.000000e+00> : vector<4x256xf32>
    %19 = tpu.matmul %18, %6, %cst_12 {dimension_numbers = #tpu.dot_dimension_numbers<[1], [0], [0], [1], [0, 0, 1, 1], [], []>} : vector<4x64xf32>, vector<64x256xf32>, vector<4x256xf32> -> vector<4x256xf32>
    %20 = vector.extract_strided_slice %5 {offsets = [0, 0], sizes = [4, 128], strides = [1, 1]} : vector<32x128xf32> to vector<4x128xf32>
    %21 = vector.extract_strided_slice %19 {offsets = [0, 0], sizes = [4, 128], strides = [1, 1]} : vector<4x256xf32> to vector<4x128xf32>
    %22 = arith.addf %20, %21 : vector<4x128xf32>
    %23 = math.tanh %22 : vector<4x128xf32>
    %24 = arith.negf %22 : vector<4x128xf32>
    %25 = math.exp %24 : vector<4x128xf32>
    %cst_13 = arith.constant 1.000000e+00 : f32
    %26 = vector.broadcast %cst_13 : f32 to vector<4x128xf32>
    %27 = arith.addf %26, %25 : vector<4x128xf32>
    %28 = arith.divf %26, %27 : vector<4x128xf32>
    %29 = arith.select %16, %23, %28 : vector<4x128xi1>, vector<4x128xf32>
    %c64_i32_14 = arith.constant 64 : i32
    %30 = tpu.dynamic_rotate %29 by %c64_i32_14 dim 1 : vector<4x128xf32>, i32 -> vector<4x128xf32>
    %31 = arith.mulf %29, %30 : vector<4x128xf32>
    %32 = vector.extract_strided_slice %31 {offsets = [0, 0], sizes = [4, 32], strides = [1, 1]} : vector<4x128xf32> to vector<4x32xf32>
    %33 = vector.extract_strided_slice %29 {offsets = [0, 32], sizes = [4, 32], strides = [1, 1]} : vector<4x128xf32> to vector<4x32xf32>
    %34 = vector.extract_strided_slice %29 {offsets = [0, 96], sizes = [4, 32], strides = [1, 1]} : vector<4x128xf32> to vector<4x32xf32>
    %35 = arith.mulf %33, %17 : vector<4x32xf32>
    %36 = arith.addf %35, %32 : vector<4x32xf32>
    %37 = math.tanh %36 : vector<4x32xf32>
    %38 = arith.mulf %34, %37 : vector<4x32xf32>
    %cst_15 = arith.constant dense<0.000000e+00> : vector<4x128xf32>
    %39 = tpu.matmul %38, %7, %cst_15 {dimension_numbers = #tpu.dot_dimension_numbers<[1], [0], [0], [1], [0, 0, 1, 1], [], []>} : vector<4x32xf32>, vector<32x128xf32>, vector<4x128xf32> -> vector<4x128xf32>
    %40 = vector.extract_strided_slice %19 {offsets = [0, 128], sizes = [4, 128], strides = [1, 1]} : vector<4x256xf32> to vector<4x128xf32>
    %41 = arith.addf %39, %40 : vector<4x128xf32>
    %42 = arith.addf %41, %10 : vector<4x128xf32>
    %43 = math.tanh %42 : vector<4x128xf32>
    %44 = arith.negf %42 : vector<4x128xf32>
    %45 = math.exp %44 : vector<4x128xf32>
    %cst_16 = arith.constant 1.000000e+00 : f32
    %46 = vector.broadcast %cst_16 : f32 to vector<4x128xf32>
    %47 = arith.addf %46, %45 : vector<4x128xf32>
    %48 = arith.divf %46, %47 : vector<4x128xf32>
    %49 = arith.select %16, %43, %48 : vector<4x128xi1>, vector<4x128xf32>
    %c64_i32_17 = arith.constant 64 : i32
    %50 = tpu.dynamic_rotate %49 by %c64_i32_17 dim 1 : vector<4x128xf32>, i32 -> vector<4x128xf32>
    %51 = arith.mulf %49, %50 : vector<4x128xf32>
    %52 = vector.extract_strided_slice %51 {offsets = [0, 0], sizes = [4, 32], strides = [1, 1]} : vector<4x128xf32> to vector<4x32xf32>
    %53 = vector.extract_strided_slice %49 {offsets = [0, 32], sizes = [4, 32], strides = [1, 1]} : vector<4x128xf32> to vector<4x32xf32>
    %54 = vector.extract_strided_slice %49 {offsets = [0, 96], sizes = [4, 32], strides = [1, 1]} : vector<4x128xf32> to vector<4x32xf32>
    %55 = arith.mulf %53, %17 : vector<4x32xf32>
    %56 = arith.addf %55, %52 : vector<4x32xf32>
    %57 = math.tanh %56 : vector<4x32xf32>
    %58 = arith.mulf %54, %57 : vector<4x32xf32>
    %59 = tpu.concatenate %38, %58 in 1 : vector<4x32xf32>, vector<4x32xf32> -> vector<4x64xf32>
    %cst_18 = arith.constant dense<0.000000e+00> : vector<4x256xf32>
    %60 = tpu.matmul %59, %6, %cst_18 {dimension_numbers = #tpu.dot_dimension_numbers<[1], [0], [0], [1], [0, 0, 1, 1], [], []>} : vector<4x64xf32>, vector<64x256xf32>, vector<4x256xf32> -> vector<4x256xf32>
    %61 = vector.extract_strided_slice %5 {offsets = [4, 0], sizes = [4, 128], strides = [1, 1]} : vector<32x128xf32> to vector<4x128xf32>
    %62 = vector.extract_strided_slice %60 {offsets = [0, 0], sizes = [4, 128], strides = [1, 1]} : vector<4x256xf32> to vector<4x128xf32>
    %63 = arith.addf %61, %62 : vector<4x128xf32>
    %64 = math.tanh %63 : vector<4x128xf32>
    %65 = arith.negf %63 : vector<4x128xf32>
    %66 = math.exp %65 : vector<4x128xf32>
    %cst_19 = arith.constant 1.000000e+00 : f32
    %67 = vector.broadcast %cst_19 : f32 to vector<4x128xf32>
    %68 = arith.addf %67, %66 : vector<4x128xf32>
    %69 = arith.divf %67, %68 : vector<4x128xf32>
    %70 = arith.select %16, %64, %69 : vector<4x128xi1>, vector<4x128xf32>
    %c64_i32_20 = arith.constant 64 : i32
    %71 = tpu.dynamic_rotate %70 by %c64_i32_20 dim 1 : vector<4x128xf32>, i32 -> vector<4x128xf32>
    %72 = arith.mulf %70, %71 : vector<4x128xf32>
    %73 = vector.extract_strided_slice %72 {offsets = [0, 0], sizes = [4, 32], strides = [1, 1]} : vector<4x128xf32> to vector<4x32xf32>
    %74 = vector.extract_strided_slice %70 {offsets = [0, 32], sizes = [4, 32], strides = [1, 1]} : vector<4x128xf32> to vector<4x32xf32>
    %75 = vector.extract_strided_slice %70 {offsets = [0, 96], sizes = [4, 32], strides = [1, 1]} : vector<4x128xf32> to vector<4x32xf32>
    %76 = arith.mulf %74, %36 : vector<4x32xf32>
    %77 = arith.addf %76, %73 : vector<4x32xf32>
    %78 = math.tanh %77 : vector<4x32xf32>
    %79 = arith.mulf %75, %78 : vector<4x32xf32>
    %cst_21 = arith.constant dense<0.000000e+00> : vector<4x128xf32>
    %80 = tpu.matmul %79, %7, %cst_21 {dimension_numbers = #tpu.dot_dimension_numbers<[1], [0], [0], [1], [0, 0, 1, 1], [], []>} : vector<4x32xf32>, vector<32x128xf32>, vector<4x128xf32> -> vector<4x128xf32>
    %81 = vector.extract_strided_slice %60 {offsets = [0, 128], sizes = [4, 128], strides = [1, 1]} : vector<4x256xf32> to vector<4x128xf32>
    %82 = arith.addf %80, %81 : vector<4x128xf32>
    %83 = arith.addf %82, %10 : vector<4x128xf32>
    %84 = math.tanh %83 : vector<4x128xf32>
    %85 = arith.negf %83 : vector<4x128xf32>
    %86 = math.exp %85 : vector<4x128xf32>
    %cst_22 = arith.constant 1.000000e+00 : f32
    %87 = vector.broadcast %cst_22 : f32 to vector<4x128xf32>
    %88 = arith.addf %87, %86 : vector<4x128xf32>
    %89 = arith.divf %87, %88 : vector<4x128xf32>
    %90 = arith.select %16, %84, %89 : vector<4x128xi1>, vector<4x128xf32>
    %c64_i32_23 = arith.constant 64 : i32
    %91 = tpu.dynamic_rotate %90 by %c64_i32_23 dim 1 : vector<4x128xf32>, i32 -> vector<4x128xf32>
    %92 = arith.mulf %90, %91 : vector<4x128xf32>
    %93 = vector.extract_strided_slice %92 {offsets = [0, 0], sizes = [4, 32], strides = [1, 1]} : vector<4x128xf32> to vector<4x32xf32>
    %94 = vector.extract_strided_slice %90 {offsets = [0, 32], sizes = [4, 32], strides = [1, 1]} : vector<4x128xf32> to vector<4x32xf32>
    %95 = vector.extract_strided_slice %90 {offsets = [0, 96], sizes = [4, 32], strides = [1, 1]} : vector<4x128xf32> to vector<4x32xf32>
    %96 = arith.mulf %94, %56 : vector<4x32xf32>
    %97 = arith.addf %96, %93 : vector<4x32xf32>
    %98 = math.tanh %97 : vector<4x32xf32>
    %99 = arith.mulf %95, %98 : vector<4x32xf32>
    %100 = tpu.concatenate %79, %99 in 1 : vector<4x32xf32>, vector<4x32xf32> -> vector<4x64xf32>
    %cst_24 = arith.constant dense<0.000000e+00> : vector<4x256xf32>
    %101 = tpu.matmul %100, %6, %cst_24 {dimension_numbers = #tpu.dot_dimension_numbers<[1], [0], [0], [1], [0, 0, 1, 1], [], []>} : vector<4x64xf32>, vector<64x256xf32>, vector<4x256xf32> -> vector<4x256xf32>
    %102 = vector.extract_strided_slice %5 {offsets = [8, 0], sizes = [4, 128], strides = [1, 1]} : vector<32x128xf32> to vector<4x128xf32>
    %103 = vector.extract_strided_slice %101 {offsets = [0, 0], sizes = [4, 128], strides = [1, 1]} : vector<4x256xf32> to vector<4x128xf32>
    %104 = arith.addf %102, %103 : vector<4x128xf32>
    %105 = math.tanh %104 : vector<4x128xf32>
    %106 = arith.negf %104 : vector<4x128xf32>
    %107 = math.exp %106 : vector<4x128xf32>
    %cst_25 = arith.constant 1.000000e+00 : f32
    %108 = vector.broadcast %cst_25 : f32 to vector<4x128xf32>
    %109 = arith.addf %108, %107 : vector<4x128xf32>
    %110 = arith.divf %108, %109 : vector<4x128xf32>
    %111 = arith.select %16, %105, %110 : vector<4x128xi1>, vector<4x128xf32>
    %c64_i32_26 = arith.constant 64 : i32
    %112 = tpu.dynamic_rotate %111 by %c64_i32_26 dim 1 : vector<4x128xf32>, i32 -> vector<4x128xf32>
    %113 = arith.mulf %111, %112 : vector<4x128xf32>
    %114 = vector.extract_strided_slice %113 {offsets = [0, 0], sizes = [4, 32], strides = [1, 1]} : vector<4x128xf32> to vector<4x32xf32>
    %115 = vector.extract_strided_slice %111 {offsets = [0, 32], sizes = [4, 32], strides = [1, 1]} : vector<4x128xf32> to vector<4x32xf32>
    %116 = vector.extract_strided_slice %111 {offsets = [0, 96], sizes = [4, 32], strides = [1, 1]} : vector<4x128xf32> to vector<4x32xf32>
    %117 = arith.mulf %115, %77 : vector<4x32xf32>
    %118 = arith.addf %117, %114 : vector<4x32xf32>
    %119 = math.tanh %118 : vector<4x32xf32>
    %120 = arith.mulf %116, %119 : vector<4x32xf32>
    %cst_27 = arith.constant dense<0.000000e+00> : vector<4x128xf32>
    %121 = tpu.matmul %120, %7, %cst_27 {dimension_numbers = #tpu.dot_dimension_numbers<[1], [0], [0], [1], [0, 0, 1, 1], [], []>} : vector<4x32xf32>, vector<32x128xf32>, vector<4x128xf32> -> vector<4x128xf32>
    %122 = vector.extract_strided_slice %101 {offsets = [0, 128], sizes = [4, 128], strides = [1, 1]} : vector<4x256xf32> to vector<4x128xf32>
    %123 = arith.addf %121, %122 : vector<4x128xf32>
    %124 = arith.addf %123, %10 : vector<4x128xf32>
    %125 = math.tanh %124 : vector<4x128xf32>
    %126 = arith.negf %124 : vector<4x128xf32>
    %127 = math.exp %126 : vector<4x128xf32>
    %cst_28 = arith.constant 1.000000e+00 : f32
    %128 = vector.broadcast %cst_28 : f32 to vector<4x128xf32>
    %129 = arith.addf %128, %127 : vector<4x128xf32>
    %130 = arith.divf %128, %129 : vector<4x128xf32>
    %131 = arith.select %16, %125, %130 : vector<4x128xi1>, vector<4x128xf32>
    %c64_i32_29 = arith.constant 64 : i32
    %132 = tpu.dynamic_rotate %131 by %c64_i32_29 dim 1 : vector<4x128xf32>, i32 -> vector<4x128xf32>
    %133 = arith.mulf %131, %132 : vector<4x128xf32>
    %134 = vector.extract_strided_slice %133 {offsets = [0, 0], sizes = [4, 32], strides = [1, 1]} : vector<4x128xf32> to vector<4x32xf32>
    %135 = vector.extract_strided_slice %131 {offsets = [0, 32], sizes = [4, 32], strides = [1, 1]} : vector<4x128xf32> to vector<4x32xf32>
    %136 = vector.extract_strided_slice %131 {offsets = [0, 96], sizes = [4, 32], strides = [1, 1]} : vector<4x128xf32> to vector<4x32xf32>
    %137 = arith.mulf %135, %97 : vector<4x32xf32>
    %138 = arith.addf %137, %134 : vector<4x32xf32>
    %139 = math.tanh %138 : vector<4x32xf32>
    %140 = arith.mulf %136, %139 : vector<4x32xf32>
    %141 = tpu.concatenate %120, %140 in 1 : vector<4x32xf32>, vector<4x32xf32> -> vector<4x64xf32>
    %cst_30 = arith.constant dense<0.000000e+00> : vector<4x256xf32>
    %142 = tpu.matmul %141, %6, %cst_30 {dimension_numbers = #tpu.dot_dimension_numbers<[1], [0], [0], [1], [0, 0, 1, 1], [], []>} : vector<4x64xf32>, vector<64x256xf32>, vector<4x256xf32> -> vector<4x256xf32>
    %143 = vector.extract_strided_slice %5 {offsets = [12, 0], sizes = [4, 128], strides = [1, 1]} : vector<32x128xf32> to vector<4x128xf32>
    %144 = vector.extract_strided_slice %142 {offsets = [0, 0], sizes = [4, 128], strides = [1, 1]} : vector<4x256xf32> to vector<4x128xf32>
    %145 = arith.addf %143, %144 : vector<4x128xf32>
    %146 = math.tanh %145 : vector<4x128xf32>
    %147 = arith.negf %145 : vector<4x128xf32>
    %148 = math.exp %147 : vector<4x128xf32>
    %cst_31 = arith.constant 1.000000e+00 : f32
    %149 = vector.broadcast %cst_31 : f32 to vector<4x128xf32>
    %150 = arith.addf %149, %148 : vector<4x128xf32>
    %151 = arith.divf %149, %150 : vector<4x128xf32>
    %152 = arith.select %16, %146, %151 : vector<4x128xi1>, vector<4x128xf32>
    %c64_i32_32 = arith.constant 64 : i32
    %153 = tpu.dynamic_rotate %152 by %c64_i32_32 dim 1 : vector<4x128xf32>, i32 -> vector<4x128xf32>
    %154 = arith.mulf %152, %153 : vector<4x128xf32>
    %155 = vector.extract_strided_slice %154 {offsets = [0, 0], sizes = [4, 32], strides = [1, 1]} : vector<4x128xf32> to vector<4x32xf32>
    %156 = vector.extract_strided_slice %152 {offsets = [0, 32], sizes = [4, 32], strides = [1, 1]} : vector<4x128xf32> to vector<4x32xf32>
    %157 = vector.extract_strided_slice %152 {offsets = [0, 96], sizes = [4, 32], strides = [1, 1]} : vector<4x128xf32> to vector<4x32xf32>
    %158 = arith.mulf %156, %118 : vector<4x32xf32>
    %159 = arith.addf %158, %155 : vector<4x32xf32>
    %160 = math.tanh %159 : vector<4x32xf32>
    %161 = arith.mulf %157, %160 : vector<4x32xf32>
    %cst_33 = arith.constant dense<0.000000e+00> : vector<4x128xf32>
    %162 = tpu.matmul %161, %7, %cst_33 {dimension_numbers = #tpu.dot_dimension_numbers<[1], [0], [0], [1], [0, 0, 1, 1], [], []>} : vector<4x32xf32>, vector<32x128xf32>, vector<4x128xf32> -> vector<4x128xf32>
    %163 = vector.extract_strided_slice %142 {offsets = [0, 128], sizes = [4, 128], strides = [1, 1]} : vector<4x256xf32> to vector<4x128xf32>
    %164 = arith.addf %162, %163 : vector<4x128xf32>
    %165 = arith.addf %164, %10 : vector<4x128xf32>
    %166 = math.tanh %165 : vector<4x128xf32>
    %167 = arith.negf %165 : vector<4x128xf32>
    %168 = math.exp %167 : vector<4x128xf32>
    %cst_34 = arith.constant 1.000000e+00 : f32
    %169 = vector.broadcast %cst_34 : f32 to vector<4x128xf32>
    %170 = arith.addf %169, %168 : vector<4x128xf32>
    %171 = arith.divf %169, %170 : vector<4x128xf32>
    %172 = arith.select %16, %166, %171 : vector<4x128xi1>, vector<4x128xf32>
    %c64_i32_35 = arith.constant 64 : i32
    %173 = tpu.dynamic_rotate %172 by %c64_i32_35 dim 1 : vector<4x128xf32>, i32 -> vector<4x128xf32>
    %174 = arith.mulf %172, %173 : vector<4x128xf32>
    %175 = vector.extract_strided_slice %174 {offsets = [0, 0], sizes = [4, 32], strides = [1, 1]} : vector<4x128xf32> to vector<4x32xf32>
    %176 = vector.extract_strided_slice %172 {offsets = [0, 32], sizes = [4, 32], strides = [1, 1]} : vector<4x128xf32> to vector<4x32xf32>
    %177 = vector.extract_strided_slice %172 {offsets = [0, 96], sizes = [4, 32], strides = [1, 1]} : vector<4x128xf32> to vector<4x32xf32>
    %178 = arith.mulf %176, %138 : vector<4x32xf32>
    %179 = arith.addf %178, %175 : vector<4x32xf32>
    %180 = math.tanh %179 : vector<4x32xf32>
    %181 = arith.mulf %177, %180 : vector<4x32xf32>
    %182 = tpu.concatenate %161, %181 in 1 : vector<4x32xf32>, vector<4x32xf32> -> vector<4x64xf32>
    %cst_36 = arith.constant dense<0.000000e+00> : vector<4x256xf32>
    %183 = tpu.matmul %182, %6, %cst_36 {dimension_numbers = #tpu.dot_dimension_numbers<[1], [0], [0], [1], [0, 0, 1, 1], [], []>} : vector<4x64xf32>, vector<64x256xf32>, vector<4x256xf32> -> vector<4x256xf32>
    %184 = vector.extract_strided_slice %5 {offsets = [16, 0], sizes = [4, 128], strides = [1, 1]} : vector<32x128xf32> to vector<4x128xf32>
    %185 = vector.extract_strided_slice %183 {offsets = [0, 0], sizes = [4, 128], strides = [1, 1]} : vector<4x256xf32> to vector<4x128xf32>
    %186 = arith.addf %184, %185 : vector<4x128xf32>
    %187 = math.tanh %186 : vector<4x128xf32>
    %188 = arith.negf %186 : vector<4x128xf32>
    %189 = math.exp %188 : vector<4x128xf32>
    %cst_37 = arith.constant 1.000000e+00 : f32
    %190 = vector.broadcast %cst_37 : f32 to vector<4x128xf32>
    %191 = arith.addf %190, %189 : vector<4x128xf32>
    %192 = arith.divf %190, %191 : vector<4x128xf32>
    %193 = arith.select %16, %187, %192 : vector<4x128xi1>, vector<4x128xf32>
    %c64_i32_38 = arith.constant 64 : i32
    %194 = tpu.dynamic_rotate %193 by %c64_i32_38 dim 1 : vector<4x128xf32>, i32 -> vector<4x128xf32>
    %195 = arith.mulf %193, %194 : vector<4x128xf32>
    %196 = vector.extract_strided_slice %195 {offsets = [0, 0], sizes = [4, 32], strides = [1, 1]} : vector<4x128xf32> to vector<4x32xf32>
    %197 = vector.extract_strided_slice %193 {offsets = [0, 32], sizes = [4, 32], strides = [1, 1]} : vector<4x128xf32> to vector<4x32xf32>
    %198 = vector.extract_strided_slice %193 {offsets = [0, 96], sizes = [4, 32], strides = [1, 1]} : vector<4x128xf32> to vector<4x32xf32>
    %199 = arith.mulf %197, %159 : vector<4x32xf32>
    %200 = arith.addf %199, %196 : vector<4x32xf32>
    %201 = math.tanh %200 : vector<4x32xf32>
    %202 = arith.mulf %198, %201 : vector<4x32xf32>
    %cst_39 = arith.constant dense<0.000000e+00> : vector<4x128xf32>
    %203 = tpu.matmul %202, %7, %cst_39 {dimension_numbers = #tpu.dot_dimension_numbers<[1], [0], [0], [1], [0, 0, 1, 1], [], []>} : vector<4x32xf32>, vector<32x128xf32>, vector<4x128xf32> -> vector<4x128xf32>
    %204 = vector.extract_strided_slice %183 {offsets = [0, 128], sizes = [4, 128], strides = [1, 1]} : vector<4x256xf32> to vector<4x128xf32>
    %205 = arith.addf %203, %204 : vector<4x128xf32>
    %206 = arith.addf %205, %10 : vector<4x128xf32>
    %207 = math.tanh %206 : vector<4x128xf32>
    %208 = arith.negf %206 : vector<4x128xf32>
    %209 = math.exp %208 : vector<4x128xf32>
    %cst_40 = arith.constant 1.000000e+00 : f32
    %210 = vector.broadcast %cst_40 : f32 to vector<4x128xf32>
    %211 = arith.addf %210, %209 : vector<4x128xf32>
    %212 = arith.divf %210, %211 : vector<4x128xf32>
    %213 = arith.select %16, %207, %212 : vector<4x128xi1>, vector<4x128xf32>
    %c64_i32_41 = arith.constant 64 : i32
    %214 = tpu.dynamic_rotate %213 by %c64_i32_41 dim 1 : vector<4x128xf32>, i32 -> vector<4x128xf32>
    %215 = arith.mulf %213, %214 : vector<4x128xf32>
    %216 = vector.extract_strided_slice %215 {offsets = [0, 0], sizes = [4, 32], strides = [1, 1]} : vector<4x128xf32> to vector<4x32xf32>
    %217 = vector.extract_strided_slice %213 {offsets = [0, 32], sizes = [4, 32], strides = [1, 1]} : vector<4x128xf32> to vector<4x32xf32>
    %218 = vector.extract_strided_slice %213 {offsets = [0, 96], sizes = [4, 32], strides = [1, 1]} : vector<4x128xf32> to vector<4x32xf32>
    %219 = arith.mulf %217, %179 : vector<4x32xf32>
    %220 = arith.addf %219, %216 : vector<4x32xf32>
    %221 = math.tanh %220 : vector<4x32xf32>
    %222 = arith.mulf %218, %221 : vector<4x32xf32>
    %223 = tpu.concatenate %202, %222 in 1 : vector<4x32xf32>, vector<4x32xf32> -> vector<4x64xf32>
    %cst_42 = arith.constant dense<0.000000e+00> : vector<4x256xf32>
    %224 = tpu.matmul %223, %6, %cst_42 {dimension_numbers = #tpu.dot_dimension_numbers<[1], [0], [0], [1], [0, 0, 1, 1], [], []>} : vector<4x64xf32>, vector<64x256xf32>, vector<4x256xf32> -> vector<4x256xf32>
    %225 = vector.extract_strided_slice %5 {offsets = [20, 0], sizes = [4, 128], strides = [1, 1]} : vector<32x128xf32> to vector<4x128xf32>
    %226 = vector.extract_strided_slice %224 {offsets = [0, 0], sizes = [4, 128], strides = [1, 1]} : vector<4x256xf32> to vector<4x128xf32>
    %227 = arith.addf %225, %226 : vector<4x128xf32>
    %228 = math.tanh %227 : vector<4x128xf32>
    %229 = arith.negf %227 : vector<4x128xf32>
    %230 = math.exp %229 : vector<4x128xf32>
    %cst_43 = arith.constant 1.000000e+00 : f32
    %231 = vector.broadcast %cst_43 : f32 to vector<4x128xf32>
    %232 = arith.addf %231, %230 : vector<4x128xf32>
    %233 = arith.divf %231, %232 : vector<4x128xf32>
    %234 = arith.select %16, %228, %233 : vector<4x128xi1>, vector<4x128xf32>
    %c64_i32_44 = arith.constant 64 : i32
    %235 = tpu.dynamic_rotate %234 by %c64_i32_44 dim 1 : vector<4x128xf32>, i32 -> vector<4x128xf32>
    %236 = arith.mulf %234, %235 : vector<4x128xf32>
    %237 = vector.extract_strided_slice %236 {offsets = [0, 0], sizes = [4, 32], strides = [1, 1]} : vector<4x128xf32> to vector<4x32xf32>
    %238 = vector.extract_strided_slice %234 {offsets = [0, 32], sizes = [4, 32], strides = [1, 1]} : vector<4x128xf32> to vector<4x32xf32>
    %239 = vector.extract_strided_slice %234 {offsets = [0, 96], sizes = [4, 32], strides = [1, 1]} : vector<4x128xf32> to vector<4x32xf32>
    %240 = arith.mulf %238, %200 : vector<4x32xf32>
    %241 = arith.addf %240, %237 : vector<4x32xf32>
    %242 = math.tanh %241 : vector<4x32xf32>
    %243 = arith.mulf %239, %242 : vector<4x32xf32>
    %cst_45 = arith.constant dense<0.000000e+00> : vector<4x128xf32>
    %244 = tpu.matmul %243, %7, %cst_45 {dimension_numbers = #tpu.dot_dimension_numbers<[1], [0], [0], [1], [0, 0, 1, 1], [], []>} : vector<4x32xf32>, vector<32x128xf32>, vector<4x128xf32> -> vector<4x128xf32>
    %245 = vector.extract_strided_slice %224 {offsets = [0, 128], sizes = [4, 128], strides = [1, 1]} : vector<4x256xf32> to vector<4x128xf32>
    %246 = arith.addf %244, %245 : vector<4x128xf32>
    %247 = arith.addf %246, %10 : vector<4x128xf32>
    %248 = math.tanh %247 : vector<4x128xf32>
    %249 = arith.negf %247 : vector<4x128xf32>
    %250 = math.exp %249 : vector<4x128xf32>
    %cst_46 = arith.constant 1.000000e+00 : f32
    %251 = vector.broadcast %cst_46 : f32 to vector<4x128xf32>
    %252 = arith.addf %251, %250 : vector<4x128xf32>
    %253 = arith.divf %251, %252 : vector<4x128xf32>
    %254 = arith.select %16, %248, %253 : vector<4x128xi1>, vector<4x128xf32>
    %c64_i32_47 = arith.constant 64 : i32
    %255 = tpu.dynamic_rotate %254 by %c64_i32_47 dim 1 : vector<4x128xf32>, i32 -> vector<4x128xf32>
    %256 = arith.mulf %254, %255 : vector<4x128xf32>
    %257 = vector.extract_strided_slice %256 {offsets = [0, 0], sizes = [4, 32], strides = [1, 1]} : vector<4x128xf32> to vector<4x32xf32>
    %258 = vector.extract_strided_slice %254 {offsets = [0, 32], sizes = [4, 32], strides = [1, 1]} : vector<4x128xf32> to vector<4x32xf32>
    %259 = vector.extract_strided_slice %254 {offsets = [0, 96], sizes = [4, 32], strides = [1, 1]} : vector<4x128xf32> to vector<4x32xf32>
    %260 = arith.mulf %258, %220 : vector<4x32xf32>
    %261 = arith.addf %260, %257 : vector<4x32xf32>
    %262 = math.tanh %261 : vector<4x32xf32>
    %263 = arith.mulf %259, %262 : vector<4x32xf32>
    %264 = tpu.concatenate %243, %263 in 1 : vector<4x32xf32>, vector<4x32xf32> -> vector<4x64xf32>
    %cst_48 = arith.constant dense<0.000000e+00> : vector<4x256xf32>
    %265 = tpu.matmul %264, %6, %cst_48 {dimension_numbers = #tpu.dot_dimension_numbers<[1], [0], [0], [1], [0, 0, 1, 1], [], []>} : vector<4x64xf32>, vector<64x256xf32>, vector<4x256xf32> -> vector<4x256xf32>
    %266 = vector.extract_strided_slice %5 {offsets = [24, 0], sizes = [4, 128], strides = [1, 1]} : vector<32x128xf32> to vector<4x128xf32>
    %267 = vector.extract_strided_slice %265 {offsets = [0, 0], sizes = [4, 128], strides = [1, 1]} : vector<4x256xf32> to vector<4x128xf32>
    %268 = arith.addf %266, %267 : vector<4x128xf32>
    %269 = math.tanh %268 : vector<4x128xf32>
    %270 = arith.negf %268 : vector<4x128xf32>
    %271 = math.exp %270 : vector<4x128xf32>
    %cst_49 = arith.constant 1.000000e+00 : f32
    %272 = vector.broadcast %cst_49 : f32 to vector<4x128xf32>
    %273 = arith.addf %272, %271 : vector<4x128xf32>
    %274 = arith.divf %272, %273 : vector<4x128xf32>
    %275 = arith.select %16, %269, %274 : vector<4x128xi1>, vector<4x128xf32>
    %c64_i32_50 = arith.constant 64 : i32
    %276 = tpu.dynamic_rotate %275 by %c64_i32_50 dim 1 : vector<4x128xf32>, i32 -> vector<4x128xf32>
    %277 = arith.mulf %275, %276 : vector<4x128xf32>
    %278 = vector.extract_strided_slice %277 {offsets = [0, 0], sizes = [4, 32], strides = [1, 1]} : vector<4x128xf32> to vector<4x32xf32>
    %279 = vector.extract_strided_slice %275 {offsets = [0, 32], sizes = [4, 32], strides = [1, 1]} : vector<4x128xf32> to vector<4x32xf32>
    %280 = vector.extract_strided_slice %275 {offsets = [0, 96], sizes = [4, 32], strides = [1, 1]} : vector<4x128xf32> to vector<4x32xf32>
    %281 = arith.mulf %279, %241 : vector<4x32xf32>
    %282 = arith.addf %281, %278 : vector<4x32xf32>
    %283 = math.tanh %282 : vector<4x32xf32>
    %284 = arith.mulf %280, %283 : vector<4x32xf32>
    %cst_51 = arith.constant dense<0.000000e+00> : vector<4x128xf32>
    %285 = tpu.matmul %284, %7, %cst_51 {dimension_numbers = #tpu.dot_dimension_numbers<[1], [0], [0], [1], [0, 0, 1, 1], [], []>} : vector<4x32xf32>, vector<32x128xf32>, vector<4x128xf32> -> vector<4x128xf32>
    %286 = vector.extract_strided_slice %265 {offsets = [0, 128], sizes = [4, 128], strides = [1, 1]} : vector<4x256xf32> to vector<4x128xf32>
    %287 = arith.addf %285, %286 : vector<4x128xf32>
    %288 = arith.addf %287, %10 : vector<4x128xf32>
    %289 = math.tanh %288 : vector<4x128xf32>
    %290 = arith.negf %288 : vector<4x128xf32>
    %291 = math.exp %290 : vector<4x128xf32>
    %cst_52 = arith.constant 1.000000e+00 : f32
    %292 = vector.broadcast %cst_52 : f32 to vector<4x128xf32>
    %293 = arith.addf %292, %291 : vector<4x128xf32>
    %294 = arith.divf %292, %293 : vector<4x128xf32>
    %295 = arith.select %16, %289, %294 : vector<4x128xi1>, vector<4x128xf32>
    %c64_i32_53 = arith.constant 64 : i32
    %296 = tpu.dynamic_rotate %295 by %c64_i32_53 dim 1 : vector<4x128xf32>, i32 -> vector<4x128xf32>
    %297 = arith.mulf %295, %296 : vector<4x128xf32>
    %298 = vector.extract_strided_slice %297 {offsets = [0, 0], sizes = [4, 32], strides = [1, 1]} : vector<4x128xf32> to vector<4x32xf32>
    %299 = vector.extract_strided_slice %295 {offsets = [0, 32], sizes = [4, 32], strides = [1, 1]} : vector<4x128xf32> to vector<4x32xf32>
    %300 = vector.extract_strided_slice %295 {offsets = [0, 96], sizes = [4, 32], strides = [1, 1]} : vector<4x128xf32> to vector<4x32xf32>
    %301 = arith.mulf %299, %261 : vector<4x32xf32>
    %302 = arith.addf %301, %298 : vector<4x32xf32>
    %303 = math.tanh %302 : vector<4x32xf32>
    %304 = arith.mulf %300, %303 : vector<4x32xf32>
    %305 = tpu.concatenate %284, %304 in 1 : vector<4x32xf32>, vector<4x32xf32> -> vector<4x64xf32>
    %cst_54 = arith.constant dense<0.000000e+00> : vector<4x256xf32>
    %306 = tpu.matmul %305, %6, %cst_54 {dimension_numbers = #tpu.dot_dimension_numbers<[1], [0], [0], [1], [0, 0, 1, 1], [], []>} : vector<4x64xf32>, vector<64x256xf32>, vector<4x256xf32> -> vector<4x256xf32>
    %307 = vector.extract_strided_slice %5 {offsets = [28, 0], sizes = [4, 128], strides = [1, 1]} : vector<32x128xf32> to vector<4x128xf32>
    %308 = vector.extract_strided_slice %306 {offsets = [0, 0], sizes = [4, 128], strides = [1, 1]} : vector<4x256xf32> to vector<4x128xf32>
    %309 = arith.addf %307, %308 : vector<4x128xf32>
    %310 = math.tanh %309 : vector<4x128xf32>
    %311 = arith.negf %309 : vector<4x128xf32>
    %312 = math.exp %311 : vector<4x128xf32>
    %cst_55 = arith.constant 1.000000e+00 : f32
    %313 = vector.broadcast %cst_55 : f32 to vector<4x128xf32>
    %314 = arith.addf %313, %312 : vector<4x128xf32>
    %315 = arith.divf %313, %314 : vector<4x128xf32>
    %316 = arith.select %16, %310, %315 : vector<4x128xi1>, vector<4x128xf32>
    %c64_i32_56 = arith.constant 64 : i32
    %317 = tpu.dynamic_rotate %316 by %c64_i32_56 dim 1 : vector<4x128xf32>, i32 -> vector<4x128xf32>
    %318 = arith.mulf %316, %317 : vector<4x128xf32>
    %319 = vector.extract_strided_slice %318 {offsets = [0, 0], sizes = [4, 32], strides = [1, 1]} : vector<4x128xf32> to vector<4x32xf32>
    %320 = vector.extract_strided_slice %316 {offsets = [0, 32], sizes = [4, 32], strides = [1, 1]} : vector<4x128xf32> to vector<4x32xf32>
    %321 = vector.extract_strided_slice %316 {offsets = [0, 96], sizes = [4, 32], strides = [1, 1]} : vector<4x128xf32> to vector<4x32xf32>
    %322 = arith.mulf %320, %282 : vector<4x32xf32>
    %323 = arith.addf %322, %319 : vector<4x32xf32>
    %324 = math.tanh %323 : vector<4x32xf32>
    %325 = arith.mulf %321, %324 : vector<4x32xf32>
    %cst_57 = arith.constant dense<0.000000e+00> : vector<4x128xf32>
    %326 = tpu.matmul %325, %7, %cst_57 {dimension_numbers = #tpu.dot_dimension_numbers<[1], [0], [0], [1], [0, 0, 1, 1], [], []>} : vector<4x32xf32>, vector<32x128xf32>, vector<4x128xf32> -> vector<4x128xf32>
    %327 = vector.extract_strided_slice %306 {offsets = [0, 128], sizes = [4, 128], strides = [1, 1]} : vector<4x256xf32> to vector<4x128xf32>
    %328 = arith.addf %326, %327 : vector<4x128xf32>
    %329 = arith.addf %328, %10 : vector<4x128xf32>
    %330 = math.tanh %329 : vector<4x128xf32>
    %331 = arith.negf %329 : vector<4x128xf32>
    %332 = math.exp %331 : vector<4x128xf32>
    %cst_58 = arith.constant 1.000000e+00 : f32
    %333 = vector.broadcast %cst_58 : f32 to vector<4x128xf32>
    %334 = arith.addf %333, %332 : vector<4x128xf32>
    %335 = arith.divf %333, %334 : vector<4x128xf32>
    %336 = arith.select %16, %330, %335 : vector<4x128xi1>, vector<4x128xf32>
    %c64_i32_59 = arith.constant 64 : i32
    %337 = tpu.dynamic_rotate %336 by %c64_i32_59 dim 1 : vector<4x128xf32>, i32 -> vector<4x128xf32>
    %338 = arith.mulf %336, %337 : vector<4x128xf32>
    %339 = vector.extract_strided_slice %338 {offsets = [0, 0], sizes = [4, 32], strides = [1, 1]} : vector<4x128xf32> to vector<4x32xf32>
    %340 = vector.extract_strided_slice %336 {offsets = [0, 32], sizes = [4, 32], strides = [1, 1]} : vector<4x128xf32> to vector<4x32xf32>
    %341 = vector.extract_strided_slice %336 {offsets = [0, 96], sizes = [4, 32], strides = [1, 1]} : vector<4x128xf32> to vector<4x32xf32>
    %342 = arith.mulf %340, %302 : vector<4x32xf32>
    %343 = arith.addf %342, %339 : vector<4x32xf32>
    %344 = math.tanh %343 : vector<4x32xf32>
    %345 = arith.mulf %341, %344 : vector<4x32xf32>
    %c0_60 = arith.constant 0 : index
    %c0_61 = arith.constant 0 : index
    %346 = vector.load %arg6[%c0_60, %c0_61] : memref<32x1xf32, #tpu.memory_space<vmem>>, vector<32x1xf32>
    %cst_62 = arith.constant dense<0.000000e+00> : vector<4x1xf32>
    %347 = tpu.matmul %345, %346, %cst_62 {dimension_numbers = #tpu.dot_dimension_numbers<[1], [0], [0], [1], [0, 0, 1, 1], [], []>} : vector<4x32xf32>, vector<32x1xf32>, vector<4x1xf32> -> vector<4x1xf32>
    %c0_63 = arith.constant 0 : index
    %c0_64 = arith.constant 0 : index
    %348 = vector.load %arg7[%c0_63, %c0_64] : memref<1x1xf32, #tpu.memory_space<vmem>>, vector<1x1xf32>
    %349 = vector.broadcast %348 : vector<1x1xf32> to vector<4x1xf32>
    %350 = arith.addf %347, %349 : vector<4x1xf32>
    %c0_65 = arith.constant 0 : index
    %c0_66 = arith.constant 0 : index
    %351 = vector.load %arg8[%c0_65, %c0_66] : memref<4x1xf32, #tpu.memory_space<vmem>>, vector<4x1xf32>
    tpu.vector_store %arg8[%c0_65, %c0_66], %350 {strides = array<i32>} : memref<4x1xf32, #tpu.memory_space<vmem>>, vector<4x1xf32>,
    %352 = tpu.concatenate %325, %323, %345, %343 in 1 : vector<4x32xf32>, vector<4x32xf32>, vector<4x32xf32>, vector<4x32xf32> -> vector<4x128xf32>
    %c0_67 = arith.constant 0 : index
    %c0_68 = arith.constant 0 : index
    %353 = vector.load %arg9[%c0_67, %c0_68] : memref<4x128xf32, #tpu.memory_space<vmem>>, vector<4x128xf32>
    tpu.vector_store %arg9[%c0_67, %c0_68], %352 {strides = array<i32>} : memref<4x128xf32, #tpu.memory_space<vmem>>, vector<4x128xf32>,
    return
  }
}

</mosaic_0001>

<bundles_post_ra>
// kernel: tpu_custom_call.1
= control target key start
LH: loop header
LB: loop body
LE: loop exit
PB: predicated region body
PF: predicated region fallthrough
CT: control target
= control target key end

     0   :  { %s3089_s0 = inlined_call_operand.vmem [shape: f32[32,1], index: 0, kind: input, shape index: {}]   ;;  %s3090_s1 = inlined_call_operand.vmem [shape: f32[1,128], index: 1, kind: input, shape index: {}]   ;;  %s3091_s2 = inlined_call_operand.vmem [shape: f32[1,128], index: 2, kind: input, shape index: {}]   ;;  %s3092_s3 = inlined_call_operand.hbm [shape: f32[64,256], index: 3, kind: input, shape index: {}]   ;;  %s3093_s4 = inlined_call_operand.vmem [shape: f32[32,128], index: 4, kind: input, shape index: {}]   ;;  %s3094_s5 = inlined_call_operand.vmem [shape: f32[1,128], index: 5, kind: input, shape index: {}]   ;;  %s3095_s6 = inlined_call_operand.vmem [shape: f32[32,1], index: 6, kind: input, shape index: {}]   ;;  %s3096_s7 = inlined_call_operand.<no memory space> [shape: f32[1,1], index: 7, kind: input, shape index: {}]   ;;  %s3097_s8 = inlined_call_operand.vmem [shape: f32[4,1], index: 8, kind: output, shape index: {0}]   ;;  %s3098_s9 = inlined_call_operand.hbm [shape: f32[4,128], index: 9, kind: output, shape index: {1}]  }
   0x1   :  { %v15_v0 = vstv %s3096_s7 }
   0x2   :  { %16 = vst [vmem:[#allocation2] sm:$0x1] %v15_v0 }
   0x3   :  { %17 = vsyncpa [#allocation4], 0 }
   0x4   :  { %18 = vsyncpa [#allocation5], 0  ;;  %s2577_s11 = smov [#allocation3]   ;;  %s2529_s15 = scalar_lea.hbm %s3092_s3, 2048 }
   0x5   :  { %s30_s12 = sshll.u32 %s2577_s11, 4  ;;  %p2530_p0 = scmp.ne.s32.totalorder %s3092_s3, %s2529_s15  ;;  %s31_s12 = int_to_ptr.vmem [resolvable:$true] %s30_s12 }
   0x6   :  { %p2533_p1 = scmp.lt.u32.totalorder %s2529_s15, %s3092_s3 }
   0x8   :  { %p2535_p2 = pnand %p2533_p1, %p2530_p0 }
   0xa   :  { %2538 = shalt.err (!%p2535_p2)
}
   0xb   :  { %s2539_s7 = scalar_lea.vmem %s31_s12, 2048  ;;  %p2544_p4 = scmp.lt.s32.totalorder %s31_s12, %s31_s12 }
   0xc   :  { %p2540_p3 = scmp.ne.s32.totalorder %s31_s12, %s2539_s7  ;;  %p2545_p5 = scmp.lt.s32.totalorder %s2539_s7, %s2539_s7 }
   0xe   :  { %p2546_p6 = por %p2545_p5, %p2544_p4 }
  0x10   :  { %p2547_p7 = pnand %p2546_p6, %p2540_p3 }
  0x12   :  { %2550 = shalt.err (!%p2547_p7)
}
  0x13   :  { %s2578_s20 = smov 256   ;;  %s2579_s21 = smov 16  }
  0x14   :  { %36 = dma.hbm_to_vmem [thread:$0]  %s3092_s3, 2048, %s31_s12, [#allocation4], %s2578_s20, %s2578_s20, %s2579_s21  }
  0x15   :  { %2573 = dma.done.wait [#allocation4], 2048  }
  0x16   :  { %2574 = vsyncadd [#allocation4], 4294965248  ;;  %v2580_v1 = vmov 0.0   ;;  %v163_v2 = vld [vmem:[#allocation3 + $0x8] sm:$0xff]  ;;  %v165_v3 = vld [vmem:[#allocation3 + $0x18] sm:$0xff]  ;;  %vm73_vm0 = vcmask 1040384   ;;  %v189_v38 = vlaneseq }
  0x17   :  { %262 = vmatprep.mubr.f32.mxu1 %v2580_v1  ;;  %v162_v4 = vld [vmem:[#allocation3] sm:$0xff]  ;;  %v2653_v5 = vpack.c.bf16 %v165_v3, %v163_v2  ;;  %v164_v6 = vld [vmem:[#allocation3 + $0x10] sm:$0xff]  ;;  %v167_v7 = vld [vmem:[#allocation3 + $0x28] sm:$0xff]  ;;  %vm60_vm1 = vcmask 7168   ;;  %s2582_s30 = smov 32   ;;  %v2583_v53 = vmov 0.0|0.0  }
  0x18   :  { %v169_v8 = vld [vmem:[#allocation3 + $0x38] sm:$0xff]  ;;  %v2655_v9 = vpack.c.bf16 %v164_v6, %v162_v4  ;;  %v166_v11 = vld [vmem:[#allocation3 + $0x20] sm:$0xff]  ;;  %v168_v12 = vld [vmem:[#allocation3 + $0x30] sm:$0xff]  ;;  %v190_v40 = vand.u32 127, %v189_v38  ;;  %vm2584_vm5 = vmmov 0   ;;  %vm296_vm6 = vcmask 261120  }
  0x19   :  { %v2657_v10 = vpack.c.bf16 %v169_v8, %v167_v7  ;;  %v171_v13 = vld [vmem:[#allocation3 + $0x48] sm:$0xff]  ;;  %2209 = vmatprep.subr.bf16.mxu1 %v2653_v5  ;;  %v173_v14 = vld [vmem:[#allocation3 + $0x58] sm:$0xff]  ;;  %v2661_v15 = vpack.c.bf16 %v168_v12, %v166_v11  ;;  %v170_v20 = vld [vmem:[#allocation3 + $0x40] sm:$0xff]  ;;  %vm194_vm7 = vcmask 523264   ;;  %vm1989_vm8 = vcmask 785408  }
  0x1a   :  { %2211 = vmatpush1.bf16.msra.mxu1 %v2655_v9  ;;  %v52_v16 = vld [vmem:[%s3090_s1] sm:$0x1]  ;;  %v49_v18 = vld [vmem:[%s3089_s0 + $0x8] sm:$0xff]  ;;  %v2673_v19 = vpack.c.bf16 %v173_v14, %v171_v13  ;;  %v172_v21 = vld [vmem:[#allocation3 + $0x50] sm:$0xff]  ;;  %vm191_vm2 = vcmp.ge.s32.totalorder %v190_v40, 64  ;;  %vm192_vm3 = vcmp.lt.s32.totalorder %v190_v40, 96 }
  0x1b   :  { %v48_v17 = vld [vmem:[%s3089_s0] sm:$0xff]  ;;  %2213 = vmatprep.subr.bf16.mxu1 %v2657_v10  ;;  %2101 = vmatprep.subr.msk.mxu0 %vm73_vm0, %v52_v16  ;;  %v175_v22 = vld [vmem:[#allocation3 + $0x68] sm:$0xff]  ;;  %v2678_v24 = vpack.c.bf16 %v172_v21, %v170_v20  ;;  %v176_v27 = vld [vmem:[#allocation3 + $0x70] sm:$0xff]  ;;  %s2585_s1 = smov 96  }
  0x1c   :  { %2102 = vmatpush3.msk.msra.mxu0 %vm73_vm0, %v52_v16  ;;  %2103 = vmatprep.mubr.msk.f32.mxu0 %vm60_vm1, %v48_v17  ;;  %v177_v23 = vld [vmem:[#allocation3 + $0x78] sm:$0xff]  ;;  %v174_v26 = vld [vmem:[#allocation3 + $0x60] sm:$0xff]  ;;  %vm2702_vm4 = vmand %vm191_vm2, %vm192_vm3 }
  0x1d   :  { %2104 = vmatmul.mubr.msk.f32.vlgmr.msra.gmra.mrb[0].mxu0 %vm60_vm1, %v49_v18  ;;  %v2681_v25 = vpack.c.bf16 %v177_v23, %v175_v22  ;;  %v2684_v28 = vpack.c.bf16 %v176_v27, %v174_v26  ;;  %v2694_v31 = vld [vmem:[%s3091_s2] ss:$0 sm:$0xff]  ;;  %s2581_s2 = smov 64   ;;  %v179_v51 = vld [vmem:[%s3093_s4 + $0x8] sm:$0xff]  ;;  %v50_v52 = vld [vmem:[%s3089_s0 + $0x10] sm:$0xff]  ;;  %2224 = vmatprep.subr.bf16.mxu0 %v2583_v53 }
  0x1e   :  { %2215 = vmatpush1.bf16.msra.mxu1 %v2661_v15  ;;  %v178_v50 = vld [vmem:[%s3093_s4] sm:$0xff]  ;;  %2106 = vmatprep.mubr.msk.f32.mxu0 %vm60_vm1, %v50_v52  ;;  %v51_v55 = vld [vmem:[%s3089_s0 + $0x18] sm:$0xff]  ;;  %v180_v56 = vld [vmem:[%s3093_s4 + $0x10] sm:$0xff] }
  0x1f   :  { %2217 = vmatprep.subr.bf16.mxu1 %v2673_v19  ;;  %v2723_v54 = vpack.c.bf16 %v179_v51, %v178_v50  ;;  %v181_v57 = vld [vmem:[%s3093_s4 + $0x18] sm:$0xff]  ;;  %v2770_v2 = vld [vmem:[%s3094_s5] ss:$0 sm:$0xff]  ;;  %v1889_v41 = vld [vmem:[%s3095_s6 + $0x10] sm:$0xff] }
  0x20   :  { %v2738_v58 = vpack.c.bf16 %v181_v57, %v180_v56 }
  0x21   :  { %2107 = vmatmul.mubr.msk.f32.gmra.mrb[2].mxu0 %vm60_vm1, %v51_v55 }
  0x22   :  { %2219 = vmatpush1.bf16.msra.mxu1 %v2678_v24  ;;  %2226 = vmatpush3.bf16.msra.mxu0 %v2723_v54 }
  0x23   :  { %2221 = vmatprep.subr.bf16.mxu1 %v2681_v25  ;;  %2117 = vmatprep.mubr.msk.f32.mxu0 %vm2584_vm5, %v2580_v1 }
  0x24   :  { %2227 = vmatprep.subr.bf16.mxu0 %v2583_v53 }
  0x26   :  { %2223 = vmatpush1.bf16.msra.mxu1 %v2684_v28  ;;  %2229 = vmatpush3.bf16.msra.mxu0 %v2738_v58 }
  0x27   :  { %2246 = vmatprep.subr.bf16.mxu1 %v2583_v53  ;;  %2231 = vmatprep.subr.bf16.mxu0 %v2653_v5 }
  0x29   :  { %263 = vmatmul.mubr.f32.vlgmr.msra.gmra.mrb[0].mxu1 %v2580_v1 }
  0x2a   :  { %2248 = vmatpush3.bf16.msra.mxu1 %v2723_v54  ;;  %2128 = vmatprep.mubr.msk.f32.mxu1 %vm2584_vm5, %v2580_v1 }
  0x2b   :  { %2249 = vmatprep.subr.bf16.mxu1 %v2583_v53 }
  0x2e   :  { %2251 = vmatpush3.bf16.msra.mxu1 %v2738_v58 }
  0x2f   :  { %2253 = vmatprep.subr.bf16.mxu1 %v2653_v5 }
  0xf0   :  { %v2689_v29 = vpop.f32.mrb[0].mxu0 }
  0xf1   :  { %v143_v30 = vpop.f32.mrb[1].mxu0 }
  0xf2   :  { %v2697_v32 = vadd.f32 %v2694_v31, %v143_v30 }
  0xf4   :  { %v2753_v62 = vpop.f32.mrb[2].mxu0 }
  0xf5   :  { %v2755_v63 = vpop.f32.mrb[3].mxu0 }
  0xfc   :  { %v264_v33 = vpop.f32.mrb[0].mxu1 }
  0xfd   :  { %v269_v34 = vadd.f32 %v264_v33, %v2697_v32  ;;  %v2700_v35 = vpop.f32.mrb[1].mxu1 }
  0xff   :  { %v2018_v36 = vmul.f32 -1.442695, %v269_v34 }
 0x101   :  { %2400 = vpow2.f32 %v2018_v36 }
 0x102   :  { %2402 = vtanh.f32 %v269_v34 }
 0x10b   :  { %v2401_v37 = vpop.eup %2400 }
 0x10c   :  { %v274_v39 = vadd.f32 1.0, %v2401_v37  ;;  %v2403_v42 = vpop.eup %2402 }
 0x10e   :  { %2404 = vrcp.f32 %v274_v39 }
 0x118   :  { %v2405_v43 = vpop.eup %2404 }
 0x119   :  { %v277_v44 = vsel %vm2702_vm4, %v2403_v42, %v2405_v43 }
 0x11a   :  { %278 = vrot.lane.b32.xlu0 %v277_v44, %s2581_s2  ;;  %v281_v47 = vmul.f32 0.0, %v277_v44 }
 0x18c   :  { %v279_v45 = vpop.permute.xlu0 %278 }
 0x18d   :  { %v280_v46 = vmul.f32 %v279_v45, %v277_v44 }
 0x18f   :  { %283 = vrot.lane.b32.xlu0 %v280_v46, %s2582_s30 }
 0x201   :  { %v284_v48 = vpop.permute.xlu0 %283 }
 0x202   :  { %v2710_v49 = vadd.f32 %v284_v48, %v281_v47 }
 0x204   :  { %2406 = vtanh.f32 %v2710_v49 }
 0x20e   :  { %v2407_v59 = vpop.eup %2406 }
 0x20f   :  { %289 = vrot.lane.b32.xlu1 %v2407_v59, %s2581_s2 }
 0x281   :  { %v290_v60 = vpop.permute.xlu1 %289 }
 0x282   :  { %v292_v61 = vmul.f32 %v290_v60, %v277_v44 }
 0x284   :  { %294 = vrot.lane.b32.xlu1 %v292_v61, %s2582_s30 }
 0x2f6   :  { %v295_v0 = vpop.permute.xlu1 %294 }
 0x2f7   :  { %2118 = vmatmul.mubr.msk.f32.vlgmr.msra.gmra.mrb[4].mxu0 %vm296_vm6, %v295_v0 }
 0x2f8   :  { %2233 = vmatpush1.bf16.msra.mxu0 %v2655_v9  ;;  %466 = vmatprep.mubr.f32.mxu0 %v2580_v1 }
 0x2f9   :  { %2235 = vmatprep.subr.bf16.mxu0 %v2657_v10 }
 0x2fc   :  { %2237 = vmatpush1.bf16.msra.mxu0 %v2661_v15 }
 0x2fd   :  { %2239 = vmatprep.subr.bf16.mxu0 %v2673_v19 }
 0x300   :  { %2241 = vmatpush1.bf16.msra.mxu0 %v2678_v24 }
 0x301   :  { %2243 = vmatprep.subr.bf16.mxu0 %v2681_v25 }
 0x304   :  { %2245 = vmatpush1.bf16.msra.mxu0 %v2684_v28 }
 0x305   :  { %2268 = vmatprep.subr.bf16.mxu0 %v2583_v53 }
 0x3ca   :  { %v365_v3 = vpop.f32.mrb[4].mxu0 }
 0x3cb   :  { %v366_v4 = vadd.f32 %v365_v3, %v2700_v35  ;;  %v2119_v6 = vpop.f32.mrb[5].mxu0 }
 0x3cd   :  { %v369_v7 = vadd.f32 %v2770_v2, %v366_v4 }
 0x3cf   :  { %v2020_v8 = vmul.f32 -1.442695, %v369_v7 }
 0x3d1   :  { %2408 = vpow2.f32 %v2020_v8 }
 0x3d2   :  { %2410 = vtanh.f32 %v369_v7 }
 0x3db   :  { %v2409_v11 = vpop.eup %2408 }
 0x3dc   :  { %v374_v12 = vadd.f32 1.0, %v2409_v11  ;;  %v2411_v13 = vpop.eup %2410 }
 0x3de   :  { %2412 = vrcp.f32 %v374_v12 }
 0x3e8   :  { %v2413_v14 = vpop.eup %2412 }
 0x3e9   :  { %v377_v16 = vsel %vm2702_vm4, %v2411_v13, %v2413_v14 }
 0x3ea   :  { %378 = vrot.lane.b32.xlu0 %v377_v16, %s2581_s2  ;;  %v381_v20 = vmul.f32 0.0, %v377_v16 }
 0x45c   :  { %v379_v17 = vpop.permute.xlu0 %378 }
 0x45d   :  { %v380_v18 = vmul.f32 %v379_v17, %v377_v16 }
 0x45f   :  { %383 = vrot.lane.b32.xlu1 %v380_v18, %s2582_s30 }
 0x4d1   :  { %v384_v21 = vpop.permute.xlu1 %383 }
 0x4d2   :  { %v2778_v22 = vadd.f32 %v384_v21, %v381_v20 }
 0x4d4   :  { %2414 = vtanh.f32 %v2778_v22 }
 0x4de   :  { %v2415_v23 = vpop.eup %2414 }
 0x4df   :  { %389 = vrot.lane.b32.xlu0 %v2415_v23, %s2581_s2 }
 0x551   :  { %v390_v26 = vpop.permute.xlu0 %389 }
 0x552   :  { %v392_v27 = vmul.f32 %v390_v26, %v377_v16 }
 0x554   :  { %395 = vrot.lane.b32.xlu1 %v392_v27, %s2581_s2 }
 0x5c6   :  { %v396_v30 = vpop.permute.xlu1 %395 }
 0x5c7   :  { %v398_v33 = vsel %vm296_vm6, %v295_v0, %v396_v30 }
 0x5c8   :  { %2021 = vmatmul.mubr.msk.f32.vlgmr.msra.gmra.mrb[6].mxu0 %vm194_vm7, %v398_v33 }
 0x5c9   :  { %2270 = vmatpush3.bf16.msra.mxu0 %v2723_v54  ;;  %2139 = vmatprep.mubr.msk.f32.mxu0 %vm2584_vm5, %v2580_v1 }
 0x5ca   :  { %2271 = vmatprep.subr.bf16.mxu0 %v2583_v53 }
 0x5cd   :  { %2273 = vmatpush3.bf16.msra.mxu0 %v2738_v58 }
 0x5ce   :  { %2275 = vmatprep.subr.bf16.mxu0 %v2653_v5 }
 0x69b   :  { %v468_v34 = vpop.f32.mrb[6].mxu0 }
 0x69c   :  { %v474_v35 = vrot.slane %v468_v34, 4  ;;  %v470_v36 = vpop.f32.mrb[7].mxu0 }
 0x69e   :  { %v476_v37 = vadd.f32 %v474_v35, %v2697_v32  ;;  %v495_v32 = vrot.slane %v2710_v49, 4 }
 0x6a0   :  { %v2022_v38 = vmul.f32 -1.442695, %v476_v37 }
 0x6a2   :  { %2416 = vpow2.f32 %v2022_v38 }
 0x6a3   :  { %2418 = vtanh.f32 %v476_v37 }
 0x6ac   :  { %v2417_v39 = vpop.eup %2416 }
 0x6ad   :  { %v481_v40 = vadd.f32 1.0, %v2417_v39  ;;  %v2419_v42 = vpop.eup %2418 }
 0x6af   :  { %2420 = vrcp.f32 %v481_v40 }
 0x6b9   :  { %v2421_v43 = vpop.eup %2420 }
 0x6ba   :  { %v484_v44 = vsel %vm2702_vm4, %v2419_v42, %v2421_v43 }
 0x6bb   :  { %v486_v45 = vrot.slane %v484_v44, 4  ;;  %v497_v50 = vmul.f32 %v495_v32, %v484_v44 }
 0x6bd   :  { %488 = vrot.lane.b32.xlu0 %v486_v45, %s2581_s2 }
 0x72f   :  { %v489_v46 = vpop.permute.xlu0 %488 }
 0x730   :  { %v491_v47 = vrot.slane %v489_v46, 4 }
 0x732   :  { %v493_v48 = vmul.f32 %v491_v47, %v484_v44 }
 0x734   :  { %499 = vrot.lane.b32.xlu1 %v493_v48, %s2582_s30 }
 0x7a6   :  { %v500_v51 = vpop.permute.xlu1 %499 }
 0x7a7   :  { %v2797_v52 = vadd.f32 %v500_v51, %v497_v50 }
 0x7a9   :  { %2422 = vtanh.f32 %v2797_v52  ;;  %v706_v46 = vrot.slane %v2797_v52, 4 }
 0x7b3   :  { %v2423_v55 = vpop.eup %2422 }
 0x7b4   :  { %505 = vrot.lane.b32.xlu0 %v2423_v55, %s2581_s2 }
 0x826   :  { %v506_v56 = vpop.permute.xlu0 %505 }
 0x827   :  { %v508_v57 = vmul.f32 %v506_v56, %v484_v44 }
 0x829   :  { %v510_v59 = vrot.slane %v508_v57, 4 }
 0x82b   :  { %511 = vrot.lane.b32.xlu1 %v510_v59, %s2582_s30 }
 0x89d   :  { %v512_v60 = vpop.permute.xlu1 %511 }
 0x89e   :  { %2129 = vmatmul.mubr.msk.f32.vlgmr.msra.gmra.mrb[2].mxu1 %vm296_vm6, %v512_v60 }
 0x89f   :  { %2255 = vmatpush1.bf16.msra.mxu1 %v2655_v9  ;;  %686 = vmatprep.mubr.f32.mxu1 %v2580_v1 }
 0x8a0   :  { %2257 = vmatprep.subr.bf16.mxu1 %v2657_v10 }
 0x8a3   :  { %2259 = vmatpush1.bf16.msra.mxu1 %v2661_v15 }
 0x8a4   :  { %2261 = vmatprep.subr.bf16.mxu1 %v2673_v19 }
 0x8a7   :  { %2263 = vmatpush1.bf16.msra.mxu1 %v2678_v24 }
 0x8a8   :  { %2265 = vmatprep.subr.bf16.mxu1 %v2681_v25 }
 0x8ab   :  { %2267 = vmatpush1.bf16.msra.mxu1 %v2684_v28 }
 0x8ac   :  { %2290 = vmatprep.subr.bf16.mxu1 %v2583_v53 }
 0x971   :  { %v581_v49 = vpop.f32.mrb[2].mxu1 }
 0x972   :  { %v582_v61 = vadd.f32 %v581_v49, %v470_v36  ;;  %v2130_v0 = vpop.f32.mrb[3].mxu1 }
 0x974   :  { %v585_v3 = vadd.f32 %v2770_v2, %v582_v61 }
 0x976   :  { %v2024_v4 = vmul.f32 -1.442695, %v585_v3 }
 0x978   :  { %2424 = vpow2.f32 %v2024_v4 }
 0x979   :  { %2426 = vtanh.f32 %v585_v3 }
 0x982   :  { %v2425_v6 = vpop.eup %2424 }
 0x983   :  { %v590_v7 = vadd.f32 1.0, %v2425_v6  ;;  %v2427_v8 = vpop.eup %2426 }
 0x985   :  { %2428 = vrcp.f32 %v590_v7 }
 0x98f   :  { %v2429_v11 = vpop.eup %2428 }
 0x990   :  { %v593_v12 = vsel %vm2702_vm4, %v2427_v8, %v2429_v11 }
 0x991   :  { %594 = vrot.lane.b32.xlu0 %v593_v12, %s2581_s2  ;;  %v597_v16 = vmul.f32 %v593_v12, %v2778_v22  ;;  %v2834_v22 = vadd.f32 %v2689_v29, %v2694_v31 }
 0xa03   :  { %v595_v13 = vpop.permute.xlu0 %594 }
 0xa04   :  { %v596_v14 = vmul.f32 %v595_v13, %v593_v12 }
 0xa06   :  { %599 = vrot.lane.b32.xlu1 %v596_v14, %s2582_s30 }
 0xa0a   :  { %609 = vrot.lane.b32.xlu1 %v508_v57, %s2582_s30 }
 0xa78   :  { %v600_v17 = vpop.permute.xlu1 %599 }
 0xa79   :  { %v2819_v18 = vadd.f32 %v600_v17, %v597_v16 }
 0xa7b   :  { %2430 = vtanh.f32 %v2819_v18 }
 0xa7c   :  { %v610_v27 = vpop.permute.xlu1 %609 }
 0xa85   :  { %v2431_v20 = vpop.eup %2430 }
 0xa86   :  { %605 = vrot.lane.b32.xlu0 %v2431_v20, %s2581_s2 }
 0xaf8   :  { %v606_v21 = vpop.permute.xlu0 %605 }
 0xaf9   :  { %v608_v23 = vmul.f32 %v606_v21, %v593_v12 }
 0xafb   :  { %v613_v26 = vrot.slane %v608_v23, 4 }
 0xafd   :  { %614 = vrot.lane.b32.xlu0 %v613_v26, %s2581_s2 }
 0xb6f   :  { %v615_v30 = vpop.permute.xlu0 %614 }
 0xb70   :  { %v617_v33 = vsel %vm296_vm6, %v610_v27, %v615_v30 }
 0xb71   :  { %v619_v34 = vrot.slane %v617_v33, 4 }
 0xb73   :  { %2025 = vmatmul.mubr.msk.f32.vlgmr.msra.gmra.mrb[4].mxu1 %vm194_vm7, %v619_v34 }
 0xb74   :  { %2292 = vmatpush3.bf16.msra.mxu1 %v2723_v54  ;;  %2150 = vmatprep.mubr.msk.f32.mxu1 %vm2584_vm5, %v2580_v1 }
 0xb75   :  { %2293 = vmatprep.subr.bf16.mxu1 %v2583_v53 }
 0xb78   :  { %2295 = vmatpush3.bf16.msra.mxu1 %v2738_v58 }
 0xb79   :  { %2297 = vmatprep.subr.bf16.mxu1 %v2653_v5 }
 0xc46   :  { %v688_v35 = vpop.f32.mrb[4].mxu1 }
 0xc47   :  { %v693_v36 = vadd.f32 %v688_v35, %v2834_v22  ;;  %v690_v37 = vpop.f32.mrb[5].mxu1 }
 0xc49   :  { %v2026_v38 = vmul.f32 -1.442695, %v693_v36 }
 0xc4b   :  { %2432 = vpow2.f32 %v2026_v38 }
 0xc4c   :  { %2434 = vtanh.f32 %v693_v36 }
 0xc55   :  { %v2433_v39 = vpop.eup %2432 }
 0xc56   :  { %v698_v40 = vadd.f32 1.0, %v2433_v39  ;;  %v2435_v42 = vpop.eup %2434 }
 0xc58   :  { %2436 = vrcp.f32 %v698_v40 }
 0xc62   :  { %v2437_v43 = vpop.eup %2436 }
 0xc63   :  { %v701_v44 = vsel %vm2702_vm4, %v2435_v42, %v2437_v43 }
 0xc64   :  { %702 = vrot.lane.b32.xlu1 %v701_v44, %s2581_s2  ;;  %v708_v47 = vmul.f32 %v706_v46, %v701_v44 }
 0xcd6   :  { %v703_v45 = vpop.permute.xlu1 %702 }
 0xcd7   :  { %v704_v29 = vmul.f32 %v703_v45, %v701_v44 }
 0xcd9   :  { %710 = vrot.lane.b32.xlu0 %v704_v29, %s2582_s30 }
 0xd4b   :  { %v711_v48 = vpop.permute.xlu0 %710 }
 0xd4c   :  { %v2842_v32 = vadd.f32 %v711_v48, %v708_v47 }
 0xd4e   :  { %2438 = vtanh.f32 %v2842_v32 }
 0xd58   :  { %v2439_v50 = vpop.eup %2438 }
 0xd59   :  { %716 = vrot.lane.b32.xlu1 %v2439_v50, %s2581_s2 }
 0xdcb   :  { %v717_v51 = vpop.permute.xlu1 %716 }
 0xdcc   :  { %v719_v55 = vmul.f32 %v717_v51, %v701_v44 }
 0xdce   :  { %721 = vrot.lane.b32.xlu0 %v719_v55, %s2582_s30 }
 0xe40   :  { %v722_v56 = vpop.permute.xlu0 %721 }
 0xe41   :  { %2140 = vmatmul.mubr.msk.f32.vlgmr.msra.gmra.mrb[8].mxu0 %vm296_vm6, %v722_v56 }
 0xe42   :  { %2277 = vmatpush1.bf16.msra.mxu0 %v2655_v9  ;;  %892 = vmatprep.mubr.f32.mxu0 %v2580_v1 }
 0xe43   :  { %2279 = vmatprep.subr.bf16.mxu0 %v2657_v10 }
 0xe46   :  { %2281 = vmatpush1.bf16.msra.mxu0 %v2661_v15 }
 0xe47   :  { %2283 = vmatprep.subr.bf16.mxu0 %v2673_v19 }
 0xe4a   :  { %2285 = vmatpush1.bf16.msra.mxu0 %v2678_v24 }
 0xe4b   :  { %2287 = vmatprep.subr.bf16.mxu0 %v2681_v25 }
 0xe4e   :  { %2289 = vmatpush1.bf16.msra.mxu0 %v2684_v28 }
 0xe4f   :  { %2312 = vmatprep.subr.bf16.mxu0 %v2583_v53 }
 0xf14   :  { %v791_v52 = vpop.f32.mrb[8].mxu0 }
 0xf15   :  { %v792_v57 = vadd.f32 %v791_v52, %v690_v37  ;;  %v2141_v59 = vpop.f32.mrb[9].mxu0 }
 0xf17   :  { %v795_v60 = vadd.f32 %v2770_v2, %v792_v57 }
 0xf19   :  { %v2028_v49 = vmul.f32 -1.442695, %v795_v60 }
 0xf1b   :  { %2440 = vpow2.f32 %v2028_v49 }
 0xf1c   :  { %2442 = vtanh.f32 %v795_v60 }
 0xf25   :  { %v2441_v61 = vpop.eup %2440 }
 0xf26   :  { %v800_v0 = vadd.f32 1.0, %v2441_v61  ;;  %v2443_v3 = vpop.eup %2442 }
 0xf28   :  { %2444 = vrcp.f32 %v800_v0 }
 0xf32   :  { %v2445_v4 = vpop.eup %2444 }
 0xf33   :  { %v803_v6 = vsel %vm2702_vm4, %v2443_v3, %v2445_v4 }
 0xf34   :  { %804 = vrot.lane.b32.xlu1 %v803_v6, %s2581_s2  ;;  %v807_v11 = vmul.f32 %v803_v6, %v2819_v18 }
 0xfa6   :  { %v805_v7 = vpop.permute.xlu1 %804 }
 0xfa7   :  { %v806_v8 = vmul.f32 %v805_v7, %v803_v6 }
 0xfa9   :  { %809 = vrot.lane.b32.xlu0 %v806_v8, %s2582_s30 }
0x101b   :  { %v810_v12 = vpop.permute.xlu0 %809 }
0x101c   :  { %v2863_v13 = vadd.f32 %v810_v12, %v807_v11 }
0x101e   :  { %2446 = vtanh.f32 %v2863_v13 }
0x1028   :  { %v2447_v14 = vpop.eup %2446 }
0x1029   :  { %815 = vrot.lane.b32.xlu1 %v2447_v14, %s2581_s2 }
0x109b   :  { %v816_v16 = vpop.permute.xlu1 %815 }
0x109c   :  { %v818_v17 = vmul.f32 %v816_v16, %v803_v6 }
0x109e   :  { %821 = vrot.lane.b32.xlu0 %v818_v17, %s2581_s2 }
0x1110   :  { %v822_v20 = vpop.permute.xlu0 %821 }
0x1111   :  { %v824_v21 = vsel %vm296_vm6, %v722_v56, %v822_v20 }
0x1112   :  { %2029 = vmatmul.mubr.msk.f32.vlgmr.msra.gmra.mrb[10].mxu0 %vm194_vm7, %v824_v21 }
0x1113   :  { %2314 = vmatpush3.bf16.msra.mxu0 %v2723_v54  ;;  %2161 = vmatprep.mubr.msk.f32.mxu0 %vm2584_vm5, %v2580_v1 }
0x1114   :  { %2315 = vmatprep.subr.bf16.mxu0 %v2583_v53 }
0x1117   :  { %2317 = vmatpush3.bf16.msra.mxu0 %v2738_v58 }
0x1118   :  { %2319 = vmatprep.subr.bf16.mxu0 %v2653_v5 }
0x11e5   :  { %v894_v18 = vpop.f32.mrb[10].mxu0 }
0x11e6   :  { %v900_v23 = vrot.slane %v894_v18, 4  ;;  %v896_v26 = vpop.f32.mrb[11].mxu0 }
0x11e8   :  { %v902_v27 = vadd.f32 %v900_v23, %v2834_v22  ;;  %v921_v22 = vrot.slane %v2842_v32, 4 }
0x11ea   :  { %v2030_v30 = vmul.f32 -1.442695, %v902_v27 }
0x11ec   :  { %2448 = vpow2.f32 %v2030_v30 }
0x11ed   :  { %2450 = vtanh.f32 %v902_v27 }
0x11f6   :  { %v2449_v33 = vpop.eup %2448 }
0x11f7   :  { %v907_v34 = vadd.f32 1.0, %v2449_v33  ;;  %v2451_v35 = vpop.eup %2450 }
0x11f9   :  { %2452 = vrcp.f32 %v907_v34 }
0x1203   :  { %v2453_v36 = vpop.eup %2452 }
0x1204   :  { %v910_v37 = vsel %vm2702_vm4, %v2451_v35, %v2453_v36 }
0x1205   :  { %v912_v38 = vrot.slane %v910_v37, 4  ;;  %v923_v43 = vmul.f32 %v921_v22, %v910_v37 }
0x1207   :  { %914 = vrot.lane.b32.xlu1 %v912_v38, %s2581_s2 }
0x1279   :  { %v915_v39 = vpop.permute.xlu1 %914 }
0x127a   :  { %v917_v40 = vrot.slane %v915_v39, 4 }
0x127c   :  { %v919_v42 = vmul.f32 %v917_v40, %v910_v37 }
0x127e   :  { %925 = vrot.lane.b32.xlu0 %v919_v42, %s2582_s30 }
0x12f0   :  { %v926_v44 = vpop.permute.xlu0 %925 }
0x12f1   :  { %v2882_v45 = vadd.f32 %v926_v44, %v923_v43 }
0x12f3   :  { %2454 = vtanh.f32 %v2882_v45  ;;  %v1132_v38 = vrot.slane %v2882_v45, 4 }
0x12fd   :  { %v2455_v29 = vpop.eup %2454 }
0x12fe   :  { %931 = vrot.lane.b32.xlu1 %v2455_v29, %s2581_s2 }
0x1370   :  { %v932_v46 = vpop.permute.xlu1 %931 }
0x1371   :  { %v934_v47 = vmul.f32 %v932_v46, %v910_v37 }
0x1373   :  { %v936_v48 = vrot.slane %v934_v47, 4 }
0x1375   :  { %937 = vrot.lane.b32.xlu0 %v936_v48, %s2582_s30 }
0x13e7   :  { %v938_v50 = vpop.permute.xlu0 %937 }
0x13e8   :  { %2151 = vmatmul.mubr.msk.f32.vlgmr.msra.gmra.mrb[6].mxu1 %vm296_vm6, %v938_v50 }
0x13e9   :  { %2299 = vmatpush1.bf16.msra.mxu1 %v2655_v9  ;;  %1112 = vmatprep.mubr.f32.mxu1 %v2580_v1 }
0x13ea   :  { %2301 = vmatprep.subr.bf16.mxu1 %v2657_v10 }
0x13ed   :  { %2303 = vmatpush1.bf16.msra.mxu1 %v2661_v15 }
0x13ee   :  { %2305 = vmatprep.subr.bf16.mxu1 %v2673_v19 }
0x13f1   :  { %2307 = vmatpush1.bf16.msra.mxu1 %v2678_v24 }
0x13f2   :  { %2309 = vmatprep.subr.bf16.mxu1 %v2681_v25 }
0x13f5   :  { %2311 = vmatpush1.bf16.msra.mxu1 %v2684_v28 }
0x13f6   :  { %2334 = vmatprep.subr.bf16.mxu1 %v2583_v53 }
0x14bb   :  { %v1007_v32 = vpop.f32.mrb[6].mxu1 }
0x14bc   :  { %v1008_v51 = vadd.f32 %v1007_v32, %v896_v26  ;;  %v2152_v55 = vpop.f32.mrb[7].mxu1 }
0x14be   :  { %v1011_v56 = vadd.f32 %v2770_v2, %v1008_v51 }
0x14c0   :  { %v2032_v52 = vmul.f32 -1.442695, %v1011_v56 }
0x14c2   :  { %2456 = vpow2.f32 %v2032_v52 }
0x14c3   :  { %2458 = vtanh.f32 %v1011_v56 }
0x14cc   :  { %v2457_v57 = vpop.eup %2456 }
0x14cd   :  { %v1016_v59 = vadd.f32 1.0, %v2457_v57  ;;  %v2459_v60 = vpop.eup %2458 }
0x14cf   :  { %2460 = vrcp.f32 %v1016_v59 }
0x14d9   :  { %v2461_v49 = vpop.eup %2460 }
0x14da   :  { %v1019_v61 = vsel %vm2702_vm4, %v2459_v60, %v2461_v49 }
0x14db   :  { %1020 = vrot.lane.b32.xlu1 %v1019_v61, %s2581_s2  ;;  %v1023_v4 = vmul.f32 %v1019_v61, %v2863_v13  ;;  %v2919_v13 = vadd.f32 %v2694_v31, %v2755_v63 }
0x154d   :  { %v1021_v0 = vpop.permute.xlu1 %1020 }
0x154e   :  { %v1022_v3 = vmul.f32 %v1021_v0, %v1019_v61 }
0x1550   :  { %1025 = vrot.lane.b32.xlu0 %v1022_v3, %s2582_s30 }
0x1554   :  { %1035 = vrot.lane.b32.xlu0 %v934_v47, %s2582_s30 }
0x15c2   :  { %v1026_v6 = vpop.permute.xlu0 %1025 }
0x15c3   :  { %v2904_v7 = vadd.f32 %v1026_v6, %v1023_v4 }
0x15c5   :  { %2462 = vtanh.f32 %v2904_v7 }
0x15c6   :  { %v1036_v16 = vpop.permute.xlu0 %1035 }
0x15cf   :  { %v2463_v8 = vpop.eup %2462 }
0x15d0   :  { %1031 = vrot.lane.b32.xlu1 %v2463_v8, %s2581_s2 }
0x1642   :  { %v1032_v11 = vpop.permute.xlu1 %1031 }
0x1643   :  { %v1034_v12 = vmul.f32 %v1032_v11, %v1019_v61 }
0x1645   :  { %v1039_v14 = vrot.slane %v1034_v12, 4 }
0x1647   :  { %1040 = vrot.lane.b32.xlu1 %v1039_v14, %s2581_s2 }
0x16b9   :  { %v1041_v17 = vpop.permute.xlu1 %1040 }
0x16ba   :  { %v1043_v20 = vsel %vm296_vm6, %v1036_v16, %v1041_v17 }
0x16bb   :  { %v1045_v21 = vrot.slane %v1043_v20, 4 }
0x16bd   :  { %2033 = vmatmul.mubr.msk.f32.vlgmr.msra.gmra.mrb[8].mxu1 %vm194_vm7, %v1045_v21 }
0x16be   :  { %2336 = vmatpush3.bf16.msra.mxu1 %v2723_v54  ;;  %2172 = vmatprep.mubr.msk.f32.mxu1 %vm2584_vm5, %v2580_v1 }
0x16bf   :  { %2337 = vmatprep.subr.bf16.mxu1 %v2583_v53 }
0x16c2   :  { %2339 = vmatpush3.bf16.msra.mxu1 %v2738_v58 }
0x16c3   :  { %2341 = vmatprep.subr.bf16.mxu1 %v2653_v5 }
0x1790   :  { %v1114_v18 = vpop.f32.mrb[8].mxu1 }
0x1791   :  { %v1119_v23 = vadd.f32 %v1114_v18, %v2919_v13  ;;  %v1116_v26 = vpop.f32.mrb[9].mxu1 }
0x1793   :  { %v2034_v27 = vmul.f32 -1.442695, %v1119_v23 }
0x1795   :  { %2464 = vpow2.f32 %v2034_v27 }
0x1796   :  { %2466 = vtanh.f32 %v1119_v23 }
0x179f   :  { %v2465_v30 = vpop.eup %2464 }
0x17a0   :  { %v1124_v33 = vadd.f32 1.0, %v2465_v30  ;;  %v2467_v34 = vpop.eup %2466 }
0x17a2   :  { %2468 = vrcp.f32 %v1124_v33 }
0x17ac   :  { %v2469_v35 = vpop.eup %2468 }
0x17ad   :  { %v1127_v36 = vsel %vm2702_vm4, %v2467_v34, %v2469_v35 }
0x17ae   :  { %1128 = vrot.lane.b32.xlu0 %v1127_v36, %s2581_s2  ;;  %v1134_v39 = vmul.f32 %v1132_v38, %v1127_v36 }
0x1820   :  { %v1129_v37 = vpop.permute.xlu0 %1128 }
0x1821   :  { %v1130_v63 = vmul.f32 %v1129_v37, %v1127_v36 }
0x1823   :  { %1136 = vrot.lane.b32.xlu1 %v1130_v63, %s2582_s30 }
0x1895   :  { %v1137_v40 = vpop.permute.xlu1 %1136 }
0x1896   :  { %v2927_v42 = vadd.f32 %v1137_v40, %v1134_v39 }
0x1898   :  { %2470 = vtanh.f32 %v2927_v42 }
0x18a2   :  { %v2471_v22 = vpop.eup %2470 }
0x18a3   :  { %1142 = vrot.lane.b32.xlu0 %v2471_v22, %s2581_s2 }
0x1915   :  { %v1143_v43 = vpop.permute.xlu0 %1142 }
0x1916   :  { %v1145_v44 = vmul.f32 %v1143_v43, %v1127_v36 }
0x1918   :  { %1147 = vrot.lane.b32.xlu1 %v1145_v44, %s2582_s30 }
0x198a   :  { %v1148_v29 = vpop.permute.xlu1 %1147 }
0x198b   :  { %2162 = vmatmul.mubr.msk.f32.vlgmr.msra.gmra.mrb[12].mxu0 %vm296_vm6, %v1148_v29 }
0x198c   :  { %2321 = vmatpush1.bf16.msra.mxu0 %v2655_v9  ;;  %1318 = vmatprep.mubr.f32.mxu0 %v2580_v1 }
0x198d   :  { %2323 = vmatprep.subr.bf16.mxu0 %v2657_v10 }
0x1990   :  { %2325 = vmatpush1.bf16.msra.mxu0 %v2661_v15 }
0x1991   :  { %2327 = vmatprep.subr.bf16.mxu0 %v2673_v19 }
0x1994   :  { %2329 = vmatpush1.bf16.msra.mxu0 %v2678_v24 }
0x1995   :  { %2331 = vmatprep.subr.bf16.mxu0 %v2681_v25 }
0x1998   :  { %2333 = vmatpush1.bf16.msra.mxu0 %v2684_v28 }
0x1999   :  { %2356 = vmatprep.subr.bf16.mxu0 %v2583_v53 }
0x1a5e   :  { %v1217_v45 = vpop.f32.mrb[12].mxu0 }
0x1a5f   :  { %v1218_v46 = vadd.f32 %v1217_v45, %v1116_v26  ;;  %v2163_v47 = vpop.f32.mrb[13].mxu0 }
0x1a61   :  { %v1221_v48 = vadd.f32 %v2770_v2, %v1218_v46 }
0x1a63   :  { %v2036_v50 = vmul.f32 -1.442695, %v1221_v48 }
0x1a65   :  { %2472 = vpow2.f32 %v2036_v50 }
0x1a66   :  { %2474 = vtanh.f32 %v1221_v48 }
0x1a6f   :  { %v2473_v32 = vpop.eup %2472 }
0x1a70   :  { %v1226_v51 = vadd.f32 1.0, %v2473_v32  ;;  %v2475_v55 = vpop.eup %2474 }
0x1a72   :  { %2476 = vrcp.f32 %v1226_v51 }
0x1a7c   :  { %v2477_v56 = vpop.eup %2476 }
0x1a7d   :  { %v1229_v52 = vsel %vm2702_vm4, %v2475_v55, %v2477_v56 }
0x1a7e   :  { %1230 = vrot.lane.b32.xlu0 %v1229_v52, %s2581_s2  ;;  %v1233_v60 = vmul.f32 %v1229_v52, %v2904_v7 }
0x1af0   :  { %v1231_v57 = vpop.permute.xlu0 %1230 }
0x1af1   :  { %v1232_v59 = vmul.f32 %v1231_v57, %v1229_v52 }
0x1af3   :  { %1235 = vrot.lane.b32.xlu1 %v1232_v59, %s2582_s30 }
0x1b65   :  { %v1236_v49 = vpop.permute.xlu1 %1235 }
0x1b66   :  { %v2948_v61 = vadd.f32 %v1236_v49, %v1233_v60 }
0x1b68   :  { %2478 = vtanh.f32 %v2948_v61 }
0x1b72   :  { %v2479_v0 = vpop.eup %2478 }
0x1b73   :  { %1241 = vrot.lane.b32.xlu0 %v2479_v0, %s2581_s2 }
0x1be5   :  { %v1242_v3 = vpop.permute.xlu0 %1241 }
0x1be6   :  { %v1244_v4 = vmul.f32 %v1242_v3, %v1229_v52 }
0x1be8   :  { %1247 = vrot.lane.b32.xlu1 %v1244_v4, %s2581_s2 }
0x1c5a   :  { %v1248_v6 = vpop.permute.xlu1 %1247 }
0x1c5b   :  { %v1250_v8 = vsel %vm296_vm6, %v1148_v29, %v1248_v6 }
0x1c5c   :  { %2037 = vmatmul.mubr.msk.f32.vlgmr.msra.gmra.mrb[14].mxu0 %vm194_vm7, %v1250_v8 }
0x1c5d   :  { %2358 = vmatpush3.bf16.msra.mxu0 %v2723_v54  ;;  %2183 = vmatprep.mubr.msk.f32.mxu0 %vm2584_vm5, %v2580_v1 }
0x1c5e   :  { %2359 = vmatprep.subr.bf16.mxu0 %v2583_v53 }
0x1c61   :  { %2361 = vmatpush3.bf16.msra.mxu0 %v2738_v58 }
0x1c62   :  { %2363 = vmatprep.subr.bf16.mxu0 %v2653_v5 }
0x1d2f   :  { %v1320_v7 = vpop.f32.mrb[14].mxu0 }
0x1d30   :  { %v1326_v11 = vrot.slane %v1320_v7, 4  ;;  %v1322_v12 = vpop.f32.mrb[15].mxu0 }
0x1d32   :  { %v1328_v14 = vadd.f32 %v1326_v11, %v2919_v13  ;;  %v1347_v13 = vrot.slane %v2927_v42, 4 }
0x1d34   :  { %v2038_v16 = vmul.f32 -1.442695, %v1328_v14 }
0x1d36   :  { %2480 = vpow2.f32 %v2038_v16 }
0x1d37   :  { %2482 = vtanh.f32 %v1328_v14 }
0x1d40   :  { %v2481_v17 = vpop.eup %2480 }
0x1d41   :  { %v1333_v20 = vadd.f32 1.0, %v2481_v17  ;;  %v2483_v21 = vpop.eup %2482 }
0x1d43   :  { %2484 = vrcp.f32 %v1333_v20 }
0x1d4d   :  { %v2485_v18 = vpop.eup %2484 }
0x1d4e   :  { %v1336_v23 = vsel %vm2702_vm4, %v2483_v21, %v2485_v18 }
0x1d4f   :  { %v1338_v26 = vrot.slane %v1336_v23, 4  ;;  %v1349_v33 = vmul.f32 %v1347_v13, %v1336_v23 }
0x1d51   :  { %1340 = vrot.lane.b32.xlu0 %v1338_v26, %s2581_s2 }
0x1dc3   :  { %v1341_v5 = vpop.permute.xlu0 %1340 }
0x1dc4   :  { %v1343_v27 = vrot.slane %v1341_v5, 4 }
0x1dc6   :  { %v1345_v30 = vmul.f32 %v1343_v27, %v1336_v23 }
0x1dc8   :  { %1351 = vrot.lane.b32.xlu1 %v1345_v30, %s2582_s30 }
0x1e3a   :  { %v1352_v34 = vpop.permute.xlu1 %1351 }
0x1e3b   :  { %v2967_v35 = vadd.f32 %v1352_v34, %v1349_v33 }
0x1e3d   :  { %2486 = vtanh.f32 %v2967_v35 }
0x1e47   :  { %v2487_v36 = vpop.eup %2486 }
0x1e48   :  { %1357 = vrot.lane.b32.xlu0 %v2487_v36, %s2581_s2 }
0x1eba   :  { %v1358_v37 = vpop.permute.xlu0 %1357 }
0x1ebb   :  { %v1360_v63 = vmul.f32 %v1358_v37, %v1336_v23 }
0x1ebd   :  { %v1362_v38 = vrot.slane %v1360_v63, 4 }
0x1ebf   :  { %1363 = vrot.lane.b32.xlu1 %v1362_v38, %s2582_s30 }
0x1f31   :  { %v1364_v39 = vpop.permute.xlu1 %1363 }
0x1f32   :  { %2173 = vmatmul.mubr.msk.f32.vlgmr.msra.gmra.mrb[10].mxu1 %vm296_vm6, %v1364_v39 }
0x1f33   :  { %2343 = vmatpush1.bf16.msra.mxu1 %v2655_v9  ;;  %1538 = vmatprep.mubr.f32.mxu1 %v2580_v1 }
0x1f34   :  { %2345 = vmatprep.subr.bf16.mxu1 %v2657_v10 }
0x1f37   :  { %2347 = vmatpush1.bf16.msra.mxu1 %v2661_v15 }
0x1f38   :  { %2349 = vmatprep.subr.bf16.mxu1 %v2673_v19 }
0x1f3b   :  { %2351 = vmatpush1.bf16.msra.mxu1 %v2678_v24 }
0x1f3c   :  { %2353 = vmatprep.subr.bf16.mxu1 %v2681_v25 }
0x1f3f   :  { %2355 = vmatpush1.bf16.msra.mxu1 %v2684_v28 }
0x1f40   :  { %2378 = vmatprep.subr.bf16.mxu1 %v2583_v53 }
0x2005   :  { %v1433_v40 = vpop.f32.mrb[10].mxu1 }
0x2006   :  { %v1434_v42 = vadd.f32 %v1433_v40, %v1322_v12  ;;  %v2174_v22 = vpop.f32.mrb[11].mxu1 }
0x2008   :  { %v1437_v43 = vadd.f32 %v2770_v2, %v1434_v42 }
0x200a   :  { %v2040_v44 = vmul.f32 -1.442695, %v1437_v43 }
0x200c   :  { %2488 = vpow2.f32 %v2040_v44 }
0x200d   :  { %2490 = vtanh.f32 %v1437_v43 }
0x2016   :  { %v2489_v29 = vpop.eup %2488 }
0x2017   :  { %v1442_v45 = vadd.f32 1.0, %v2489_v29  ;;  %v2491_v46 = vpop.eup %2490 }
0x2019   :  { %2492 = vrcp.f32 %v1442_v45 }
0x2023   :  { %v2493_v47 = vpop.eup %2492 }
0x2024   :  { %v1445_v48 = vsel %vm2702_vm4, %v2491_v46, %v2493_v47 }
0x2025   :  { %1446 = vrot.lane.b32.xlu0 %v1445_v48, %s2581_s2  ;;  %v1449_v51 = vmul.f32 %v1445_v48, %v2948_v61  ;;  %v3004_v61 = vadd.f32 %v2753_v62, %v2694_v31  ;;  %v1558_v62 = vrot.slane %v2967_v35, 4 }
0x2097   :  { %v1447_v50 = vpop.permute.xlu0 %1446 }
0x2098   :  { %v1448_v32 = vmul.f32 %v1447_v50, %v1445_v48 }
0x209a   :  { %1451 = vrot.lane.b32.xlu1 %v1448_v32, %s2582_s30 }
0x209e   :  { %1461 = vrot.lane.b32.xlu1 %v1360_v63, %s2582_s30 }
0x210c   :  { %v1452_v55 = vpop.permute.xlu1 %1451 }
0x210d   :  { %v2989_v56 = vadd.f32 %v1452_v55, %v1449_v51 }
0x210f   :  { %2494 = vtanh.f32 %v2989_v56 }
0x2110   :  { %v1462_v49 = vpop.permute.xlu1 %1461 }
0x2119   :  { %v2495_v52 = vpop.eup %2494 }
0x211a   :  { %1457 = vrot.lane.b32.xlu0 %v2495_v52, %s2581_s2 }
0x218c   :  { %v1458_v57 = vpop.permute.xlu0 %1457 }
0x218d   :  { %v1460_v59 = vmul.f32 %v1458_v57, %v1445_v48 }
0x218f   :  { %v1465_v60 = vrot.slane %v1460_v59, 4 }
0x2191   :  { %1466 = vrot.lane.b32.xlu0 %v1465_v60, %s2581_s2 }
0x2203   :  { %v1467_v0 = vpop.permute.xlu0 %1466 }
0x2204   :  { %v1469_v3 = vsel %vm296_vm6, %v1462_v49, %v1467_v0 }
0x2205   :  { %v1471_v4 = vrot.slane %v1469_v3, 4 }
0x2207   :  { %2041 = vmatmul.mubr.msk.f32.vlgmr.msra.gmra.mrb[12].mxu1 %vm194_vm7, %v1471_v4 }
0x2208   :  { %2380 = vmatpush3.bf16.msra.mxu1 %v2723_v54  ;;  %2194 = vmatprep.mubr.msk.f32.mxu1 %vm2584_vm5, %v2580_v1 }
0x2209   :  { %2381 = vmatprep.subr.bf16.mxu1 %v2583_v53 }
0x220c   :  { %2383 = vmatpush3.bf16.msra.mxu1 %v2738_v58 }
0x220d   :  { %2384 = vmatprep.subr.bf16.mxu1 %v2583_v53 }
0x22da   :  { %v1540_v6 = vpop.f32.mrb[12].mxu1 }
0x22db   :  { %v1545_v8 = vadd.f32 %v1540_v6, %v3004_v61  ;;  %v1542_v7 = vpop.f32.mrb[13].mxu1 }
0x22dd   :  { %v2042_v11 = vmul.f32 -1.442695, %v1545_v8 }
0x22df   :  { %2496 = vpow2.f32 %v2042_v11 }
0x22e0   :  { %2498 = vtanh.f32 %v1545_v8 }
0x22e9   :  { %v2497_v54 = vpop.eup %2496 }
0x22ea   :  { %v1550_v12 = vadd.f32 1.0, %v2497_v54  ;;  %v2499_v14 = vpop.eup %2498  ;;  %v2528_v54 = vld [vmem:[%s3094_s5] ss:$0 sm:$0xff] }
0x22ec   :  { %2500 = vrcp.f32 %v1550_v12 }
0x22f6   :  { %v2501_v16 = vpop.eup %2500 }
0x22f7   :  { %v1553_v58 = vsel %vm2702_vm4, %v2499_v14, %v2501_v16 }
0x22f8   :  { %1554 = vrot.lane.b32.xlu1 %v1553_v58, %s2581_s2  ;;  %v1560_v20 = vmul.f32 %v1558_v62, %v1553_v58 }
0x236a   :  { %v1555_v17 = vpop.permute.xlu1 %1554 }
0x236b   :  { %v1556_v31 = vmul.f32 %v1555_v17, %v1553_v58 }
0x236d   :  { %1562 = vrot.lane.b32.xlu0 %v1556_v31, %s2582_s30 }
0x23df   :  { %v1563_v21 = vpop.permute.xlu0 %1562 }
0x23e0   :  { %v3012_v18 = vadd.f32 %v1563_v21, %v1560_v20 }
0x23e2   :  { %2502 = vtanh.f32 %v3012_v18  ;;  %v1773_v57 = vrot.slane %v3012_v18, 4 }
0x23ec   :  { %v2503_v23 = vpop.eup %2502 }
0x23ed   :  { %1568 = vrot.lane.b32.xlu1 %v2503_v23, %s2581_s2 }
0x245f   :  { %v1569_v26 = vpop.permute.xlu1 %1568 }
0x2460   :  { %v1571_v5 = vmul.f32 %v1569_v26, %v1553_v58  ;;  %v1887_v26 = vld [vmem:[%s3095_s6] sm:$0xff] }
0x2462   :  { %1573 = vrot.lane.b32.xlu0 %v1571_v5, %s2582_s30  ;;  %v1888_v5 = vld [vmem:[%s3095_s6 + $0x8] sm:$0xff] }
0x24d4   :  { %v1574_v27 = vpop.permute.xlu0 %1573 }
0x24d5   :  { %2184 = vmatmul.mubr.msk.f32.vlgmr.msra.gmra.mrb[16].mxu0 %vm296_vm6, %v1574_v27 }
0x24d6   :  { %2365 = vmatpush1.bf16.msra.mxu0 %v2655_v9  ;;  %1744 = vmatprep.mubr.f32.mxu0 %v2580_v1 }
0x24d7   :  { %2367 = vmatprep.subr.bf16.mxu0 %v2657_v10 }
0x24da   :  { %2369 = vmatpush1.bf16.msra.mxu0 %v2661_v15 }
0x24db   :  { %2371 = vmatprep.subr.bf16.mxu0 %v2673_v19 }
0x24de   :  { %2373 = vmatpush1.bf16.msra.mxu0 %v2678_v24 }
0x24df   :  { %2375 = vmatprep.subr.bf16.mxu0 %v2681_v25 }
0x24e2   :  { %2377 = vmatpush1.bf16.msra.mxu0 %v2684_v28 }
0x25a8   :  { %v1643_v30 = vpop.f32.mrb[16].mxu0 }
0x25a9   :  { %v1644_v13 = vadd.f32 %v1643_v30, %v1542_v7  ;;  %v2185_v33 = vpop.f32.mrb[17].mxu0  ;;  %v1890_v30 = vld [vmem:[%s3095_s6 + $0x18] sm:$0xff]  ;;  %s2586_s6 = smov [#allocation6]  }
0x25aa   :  { %s2000_s29 = sshll.u32 %s2586_s6, 4  ;;  %s2001_s29 = int_to_ptr.vmem [resolvable:$true] %s2000_s29 }
0x25ab   :  { %v1647_v34 = vadd.f32 %v2770_v2, %v1644_v13  ;;  %v2388_v13 = vpack.c.bf16 %v1890_v30, %v1889_v41  ;;  %p2556_p9 = scmp.lt.s32.totalorder %s2001_s29, %s2001_s29 }
0x25ad   :  { %v2044_v9 = vmul.f32 -1.442695, %v1647_v34 }
0x25af   :  { %2504 = vpow2.f32 %v2044_v9 }
0x25b0   :  { %2506 = vtanh.f32 %v1647_v34 }
0x25b9   :  { %v2505_v35 = vpop.eup %2504 }
0x25ba   :  { %v1652_v36 = vadd.f32 1.0, %v2505_v35  ;;  %v2507_v10 = vpop.eup %2506 }
0x25bc   :  { %2508 = vrcp.f32 %v1652_v36 }
0x25c6   :  { %v2509_v15 = vpop.eup %2508 }
0x25c7   :  { %v1655_v19 = vsel %vm2702_vm4, %v2507_v10, %v2509_v15 }
0x25c8   :  { %1656 = vrot.lane.b32.xlu1 %v1655_v19, %s2581_s2  ;;  %v1659_v28 = vmul.f32 %v1655_v19, %v2989_v56 }
0x263a   :  { %v1657_v24 = vpop.permute.xlu1 %1656 }
0x263b   :  { %v1658_v25 = vmul.f32 %v1657_v24, %v1655_v19 }
0x263d   :  { %1661 = vrot.lane.b32.xlu0 %v1658_v25, %s2582_s30 }
0x26af   :  { %v1662_v2 = vpop.permute.xlu0 %1661 }
0x26b0   :  { %v1664_v37 = vadd.f32 %v1662_v2, %v1659_v28 }
0x26b2   :  { %2510 = vtanh.f32 %v1664_v37 }
0x26bc   :  { %v2511_v63 = vpop.eup %2510 }
0x26bd   :  { %1667 = vrot.lane.b32.xlu1 %v2511_v63, %s2581_s2 }
0x272f   :  { %v1668_v38 = vpop.permute.xlu1 %1667 }
0x2730   :  { %v1670_v39 = vmul.f32 %v1668_v38, %v1655_v19 }
0x2732   :  { %1673 = vrot.lane.b32.xlu0 %v1670_v39, %s2581_s2 }
0x27a4   :  { %v1674_v40 = vpop.permute.xlu0 %1673 }
0x27a5   :  { %v1676_v42 = vsel %vm296_vm6, %v1574_v27, %v1674_v40  ;;  %v2385_v27 = vpack.c.bf16 %v1888_v5, %v1887_v26 }
0x27a6   :  { %2045 = vmatmul.mubr.msk.f32.vlgmr.msra.gmra.mrb[18].mxu0 %vm194_vm7, %v1676_v42 }
0x2879   :  { %v1746_v22 = vpop.f32.mrb[18].mxu0 }
0x287a   :  { %v1752_v43 = vrot.slane %v1746_v22, 4  ;;  %v1748_v44 = vpop.f32.mrb[19].mxu0 }
0x287c   :  { %v1754_v29 = vadd.f32 %v1752_v43, %v3004_v61 }
0x287e   :  { %v2046_v45 = vmul.f32 -1.442695, %v1754_v29 }
0x2880   :  { %2512 = vpow2.f32 %v2046_v45 }
0x2881   :  { %2514 = vtanh.f32 %v1754_v29 }
0x288a   :  { %v2513_v46 = vpop.eup %2512 }
0x288b   :  { %v1759_v47 = vadd.f32 1.0, %v2513_v46  ;;  %v2515_v48 = vpop.eup %2514 }
0x288d   :  { %2516 = vrcp.f32 %v1759_v47 }
0x2897   :  { %v2517_v50 = vpop.eup %2516 }
0x2898   :  { %v1762_v32 = vsel %vm2702_vm4, %v2515_v48, %v2517_v50 }
0x2899   :  { %v1764_v51 = vrot.slane %v1762_v32, 4  ;;  %v1775_v59 = vmul.f32 %v1773_v57, %v1762_v32 }
0x289b   :  { %1766 = vrot.lane.b32.xlu1 %v1764_v51, %s2581_s2 }
0x290d   :  { %v1767_v55 = vpop.permute.xlu1 %1766 }
0x290e   :  { %v1769_v56 = vrot.slane %v1767_v55, 4 }
0x2910   :  { %v1771_v52 = vmul.f32 %v1769_v56, %v1762_v32 }
0x2912   :  { %1777 = vrot.lane.b32.xlu0 %v1771_v52, %s2582_s30 }
0x2984   :  { %v1778_v60 = vpop.permute.xlu0 %1777 }
0x2985   :  { %v1780_v49 = vadd.f32 %v1778_v60, %v1775_v59 }
0x2987   :  { %2518 = vtanh.f32 %v1780_v49 }
0x2991   :  { %v2519_v0 = vpop.eup %2518 }
0x2992   :  { %1783 = vrot.lane.b32.xlu1 %v2519_v0, %s2581_s2 }
0x2a04   :  { %v1784_v3 = vpop.permute.xlu1 %1783 }
0x2a05   :  { %v1786_v4 = vmul.f32 %v1784_v3, %v1762_v32 }
0x2a07   :  { %v1788_v61 = vrot.slane %v1786_v4, 4 }
0x2a09   :  { %1789 = vrot.lane.b32.xlu0 %v1788_v61, %s2582_s30 }
0x2a7b   :  { %v1790_v6 = vpop.permute.xlu0 %1789 }
0x2a7c   :  { %2195 = vmatmul.mubr.msk.f32.vlgmr.msra.gmra.mrb[14].mxu1 %vm296_vm6, %v1790_v6 }
0x2a7d   :  { %2205 = vmatprep.mubr.msk.f32.mxu1 %vm2584_vm5, %v2580_v1  ;;  %2386 = vmatpush3.bf16.msra.mxu1 %v2385_v27 }
0x2a7e   :  { %2387 = vmatprep.subr.bf16.mxu1 %v2583_v53 }
0x2a81   :  { %2389 = vmatpush3.bf16.msra.mxu1 %v2388_v13 }
0x2b4f   :  { %v1859_v8 = vpop.f32.mrb[14].mxu1 }
0x2b50   :  { %v1860_v7 = vadd.f32 %v1859_v8, %v1748_v44  ;;  %v2196_v11 = vpop.f32.mrb[15].mxu1 }
0x2b52   :  { %v1863_v12 = vadd.f32 %v2528_v54, %v1860_v7 }
0x2b54   :  { %v2048_v14 = vmul.f32 -1.442695, %v1863_v12 }
0x2b56   :  { %2520 = vpow2.f32 %v2048_v14 }
0x2b57   :  { %2522 = vtanh.f32 %v1863_v12 }
0x2b60   :  { %v2521_v16 = vpop.eup %2520 }
0x2b61   :  { %v1868_v58 = vadd.f32 1.0, %v2521_v16  ;;  %v2523_v17 = vpop.eup %2522 }
0x2b63   :  { %2524 = vrcp.f32 %v1868_v58 }
0x2b6d   :  { %v2525_v31 = vpop.eup %2524 }
0x2b6e   :  { %v1871_v62 = vsel %vm2702_vm4, %v2523_v17, %v2525_v31 }
0x2b6f   :  { %1872 = vrot.lane.b32.xlu1 %v1871_v62, %s2581_s2  ;;  %v1875_v21 = vmul.f32 %v1871_v62, %v1664_v37 }
0x2be1   :  { %v1873_v1 = vpop.permute.xlu1 %1872 }
0x2be2   :  { %v1874_v20 = vmul.f32 %v1873_v1, %v1871_v62 }
0x2be4   :  { %1877 = vrot.lane.b32.xlu0 %v1874_v20, %s2582_s30 }
0x2c56   :  { %v1878_v18 = vpop.permute.xlu0 %1877 }
0x2c57   :  { %v1880_v23 = vadd.f32 %v1878_v18, %v1875_v21 }
0x2c59   :  { %2526 = vtanh.f32 %v1880_v23  ;;  %v1983_v34 = vrot.slane %v1880_v23, 4 }
0x2c63   :  { %v2527_v33 = vpop.eup %2526 }
0x2c64   :  { %1883 = vrot.lane.b32.xlu1 %v2527_v33, %s2581_s2 }
0x2c68   :  { %1975 = vrot.lane.b32.xlu1 %v1786_v4, %s2582_s30 }
0x2c6c   :  { %1984 = vrot.lane.b32.xlu1 %v1983_v34, %s2581_s2  ;;  %s2551_s2 = scalar_lea.vmem %s2001_s29, 64 }
0x2c6d   :  { %p2552_p8 = scmp.ne.s32.totalorder %s2001_s29, %s2551_s2  ;;  %p2557_p10 = scmp.lt.s32.totalorder %s2551_s2, %s2551_s2 }
0x2c6f   :  { %p2558_p11 = por %p2557_p10, %p2556_p9 }
0x2c71   :  { %p2559_p12 = pnand %p2558_p11, %p2552_p8 }
0x2cd6   :  { %v1884_v9 = vpop.permute.xlu1 %1883 }
0x2cd7   :  { %v1886_v35 = vmul.f32 %v1884_v9, %v1871_v62 }
0x2cd9   :  { %1899 = vrot.lane.b32.xlu0 %v1886_v35, %s2582_s30  ;;  %v1978_v36 = vrot.slane %v1886_v35, 4 }
0x2cda   :  { %v1976_v10 = vpop.permute.xlu1 %1975 }
0x2cdb   :  { %v1987_v53 = vsel %vm296_vm6, %v1976_v10, %v1780_v49 }
0x2cdd   :  { %1979 = vrot.lane.b32.xlu0 %v1978_v36, %s2585_s1 }
0x2cde   :  { %v1985_v24 = vpop.permute.xlu1 %1984 }
0x2d4b   :  { %v1900_v15 = vpop.permute.xlu0 %1899 }
0x2d4c   :  { %2206 = vmatmul.mubr.msk.f32.vlgmr.msra.gmra.mrb[16].mxu1 %vm296_vm6, %v1900_v15 }
0x2d4f   :  { %v1980_v19 = vpop.permute.xlu0 %1979 }
0x2d50   :  { %v1988_v25 = vsel %vm194_vm7, %v1987_v53, %v1980_v19 }
0x2d51   :  { %v1990_v28 = vsel %vm1989_vm8, %v1988_v25, %v1985_v24 }
0x2d52   :  { %1991 = vst [vmem:[#allocation6 - $0x4] sm:$0xf0] %v1990_v28 }
0x2d53   :  { %2562 = shalt.err (!%p2559_p12)
}
0x2d54   :  { %s2563_s11 = scalar_lea.hbm %s3098_s9, 64 }
0x2d55   :  { %p2564_p13 = scmp.ne.s32.totalorder %s3098_s9, %s2563_s11  ;;  %p2567_p0 = scmp.lt.u32.totalorder %s2563_s11, %s3098_s9 }
0x2d57   :  { %p2569_p1 = pnand %p2567_p0, %p2564_p13 }
0x2d59   :  { %2572 = shalt.err (!%p2569_p1)
}
0x2d5a   :  { %2003 = dma.vmem_to_hbm [thread:$0]  %s2001_s29, 64, %s3098_s9, [#allocation5]   ;;  %v2049_v2 = vld [vmem:[#allocation2] ss:$0 sm:$0xff]  ;;  %vm1973_vm9 = vcmask 3072  }
0x2e1f   :  { %v1969_v37 = vpop.f32.mrb[16].mxu1 }
0x2e20   :  { %v1970_v63 = vadd.f32 %v2049_v2, %v1969_v37  ;;  %v2207_v38 = vpop.f32.mrb[17].mxu1 }
0x2e22   :  { %1974 = vst.msk [vmem:[%s3097_s8] sm:$0xf] %vm1973_vm9, %v1970_v63 }
0x2e23   :  { %2575 = dma.done.wait [#allocation5], 64  }
0x2e24   :  { %2576 = vsyncadd [#allocation5], 4294967232 }
0x2e25   :  { %2009 = vsyncpa [#allocation4], 1 }
0x2e26   :  { %2010 = vsyncpa [#allocation5], 1 }

</bundles_post_ra>
